<compile_context>
chip_gen: v6e
topology: v6e:2x2x1
jax: 0.10.0
libtpu: 0.0.40
codegen_flags: <defaults>
</compile_context>

<pallas_src>
import functools

import jax
import jax.numpy as jnp
from jax.experimental import pallas as pl
from jax.experimental.pallas import tpu as pltpu


# Scoped-VMEM budget: fits v7x (64 MiB physical) with headroom, above v5e/v6e defaults.
_VMEM_LIMIT = 48 * 1024 * 1024


def _round_up(x, m):
    return (x + m - 1) // m * m


def _pick_tile(dim, candidates):
    """Largest candidate tile that divides `dim` (avoids any ragged/padded tiles)."""
    for c in candidates:
        if c <= dim and dim % c == 0:
            return c
    return dim


# ----------------------------------------------------------------------------
# Kernel 1: tiled linear  y = x @ W + b  (optional ReLU), M/N tiled.
#   Weights may be bf16 (activations are cast at the dot operand); accumulate f32.
# ----------------------------------------------------------------------------
def _linear_kernel(x_ref, w_ref, b_ref, o_ref, *, apply_relu):
    acc = jnp.dot(x_ref[...].astype(w_ref.dtype), w_ref[...],
                  preferred_element_type=jnp.float32)
    acc = acc + b_ref[...]
    if apply_relu:
        acc = jnp.maximum(acc, 0.0)
    o_ref[...] = acc.astype(o_ref.dtype)


def pallas_linear(x, w, b, *, relu=False, n_out=None, tm=256, tn=256):
    """y = x @ w + b (optional relu).  x:[M,K] f32, w:[K,Np] (bf16/f32, Np%128==0), b:[Np]."""
    M, K = x.shape
    Kw, Np = w.shape
    assert K == Kw
    assert Np % 128 == 0, "pad weight columns to a multiple of 128 once at init"
    b2 = b.reshape(1, Np).astype(jnp.float32)

    # M is padded only to a sublane multiple (tiny copy, none when M % 8 == 0);
    # weights/biases are never padded at runtime.
    Mp = _round_up(M, 8)
    xp = x if Mp == M else jnp.pad(x, ((0, Mp - M), (0, 0)))

    tm = _pick_tile(Mp, (tm, 256, 128, 64, 32, 16, 8))
    tn = _pick_tile(Np, (tn, 512, 256, 128))

    # TODO(synk): add K-tiling with a VMEM f32 accumulator for production K >> 2048.
    out = pl.pallas_call(
        functools.partial(_linear_kernel, apply_relu=relu),
        out_shape=jax.ShapeDtypeStruct((Mp, Np), jnp.float32),
        grid=(Mp // tm, Np // tn),
        in_specs=[
            pl.BlockSpec((tm, K), lambda i, j: (i, 0)),
            pl.BlockSpec((K, tn), lambda i, j: (0, j)),
            pl.BlockSpec((1, tn), lambda i, j: (0, j)),
        ],
        out_specs=pl.BlockSpec((tm, tn), lambda i, j: (i, j)),
        compiler_params=pltpu.CompilerParams(
            dimension_semantics=("parallel", "parallel"),
            vmem_limit_bytes=_VMEM_LIMIT),
    )(xp, w, b2)

    if n_out is None:
        n_out = Np
    if Mp == M and n_out == Np:
        return out
    return out[:M, :n_out]


# ----------------------------------------------------------------------------
# Kernel 2: fused dual GRU recurrence (q-GRU and a-GRU in one launch).
#   XP (= x @ W_ih + b_ih) is precomputed outside with one big matmul; only
#   hp = h @ W_hh + b_hh stays on the serial critical path.
#   PyTorch nn.GRU semantics, gate order r | z | n:
#     r = sig(xr + hr); z = sig(xz + hz); n = tanh(xn + r*hn); h' = (1-z)*n + z*h
# ----------------------------------------------------------------------------
def _dual_gru_kernel(xp_ref, whh_ref, bhh_ref, hlast_ref, h_scratch, *, H, t_q, t_a):
    g = pl.program_id(0)      # which GRU: 0 = question, 1 = answer
    t = pl.program_id(1)      # time step

    @pl.when(t == 0)
    def _():
        h_scratch[...] = jnp.zeros_like(h_scratch)

    seq_len = jnp.where(g == 0, t_q, t_a)

    @pl.when(t < seq_len)     # gate padded steps of the shorter sequence
    def _():
        h = h_scratch[...]                                    # [B, H] f32
        xp = xp_ref[0]                                        # [B, 3H] f32 (precomputed)
        hp = jnp.dot(h.astype(whh_ref.dtype), whh_ref[0],
                     preferred_element_type=jnp.float32) + bhh_ref[0]
        xr, xz, xn = xp[:, 0:H], xp[:, H:2 * H], xp[:, 2 * H:3 * H]
        hr, hz, hn = hp[:, 0:H], hp[:, H:2 * H], hp[:, 2 * H:3 * H]
        r = jax.nn.sigmoid(xr + hr)
        z = jax.nn.sigmoid(xz + hz)
        n = jnp.tanh(xn + r * hn)
        h_new = (1.0 - z) * n + z * h
        h_scratch[...] = h_new
        hlast_ref[0] = h_new.astype(hlast_ref.dtype)


def pallas_dual_gru(xp_flat, whh_st, bhh_st, *, t_q, t_a, t_max, H):
    """xp_flat: [2*t_max, B, 3H] f32 (q rows then a rows) -> last hidden [2, B, H]."""
    _, B, H3 = xp_flat.shape
    # TODO(synk): mark W_hh/b_hh with pipeline_mode=pl.Buffered(1) once single-buffered
    #             revisited blocks are verified on the target jaxlib (bf16 already halves them).
    return pl.pallas_call(
        functools.partial(_dual_gru_kernel, H=H, t_q=t_q, t_a=t_a),
        out_shape=jax.ShapeDtypeStruct((2, B, H), jnp.float32),
        grid=(2, t_max),
        in_specs=[
            pl.BlockSpec((1, B, H3), lambda g, t: (g * t_max + t, 0, 0)),  # xp_t streamed
            pl.BlockSpec((1, H, H3), lambda g, t: (g, 0, 0)),              # W_hh resident per GRU
            pl.BlockSpec((1, 1, H3), lambda g, t: (g, 0, 0)),              # b_hh resident per GRU
        ],
        out_specs=pl.BlockSpec((1, B, H), lambda g, t: (g, 0, 0)),
        scratch_shapes=[pltpu.VMEM((B, H), jnp.float32)],
        compiler_params=pltpu.CompilerParams(
            dimension_semantics=("parallel", "arbitrary"),   # 2 TCs on v7x take one GRU each
            vmem_limit_bytes=_VMEM_LIMIT),
    )(xp_flat, whh_st, bhh_st)


# ----------------------------------------------------------------------------
# Kernel 3: AllAttention, tiled over batch.
#   joint  = relu(Wv v) * relu(Wq q) * relu(Wa aq)     (Wv v precomputed, tiled)
#   att    = softmax(<joint, w_att> + b_att, over regions)
#   va     = sum_k att[k] * v[k] ;  vsum = sum_k v[k]
#   The q/a/w_att factors are folded into one [tb,H] effective weight so no
#   [B,K,H] joint temporary is materialized.
# ----------------------------------------------------------------------------
def _attn_pool_kernel(vp_ref, v_ref, q_ref, a_ref, wq_ref, bq_ref, wa_ref, ba_ref,
                      watt_ref, batt_ref, va_ref, vs_ref):
    qp = jnp.maximum(
        jnp.dot(q_ref[...].astype(wq_ref.dtype), wq_ref[...],
                preferred_element_type=jnp.float32) + bq_ref[...], 0.0)   # [tb, H]
    ap = jnp.maximum(
        jnp.dot(a_ref[...].astype(wa_ref.dtype), wa_ref[...],
                preferred_element_type=jnp.float32) + ba_ref[...], 0.0)   # [tb, H]

    w_eff = qp * ap * watt_ref[...]                                       # [tb, H]
    logit = jnp.sum(vp_ref[...] * w_eff[:, None, :], axis=-1, keepdims=True) + batt_ref[0]
    logit = logit - jnp.max(logit, axis=1, keepdims=True)                 # [tb, K, 1]
    e = jnp.exp(logit)
    inv = pl.reciprocal(jnp.sum(e, axis=1, keepdims=True), approx=True)   # EUP, frees VPU
    att = e * inv                                                         # softmax over regions

    v = v_ref[...]                                                        # [tb, K, Dv]
    va_ref[...] = jnp.sum(att * v, axis=1).astype(va_ref.dtype)
    # NOTE: reference BaseModel feeds the region-SUM of v into v_net (not the mean).
    vs_ref[...] = jnp.sum(v, axis=1).astype(vs_ref.dtype)


def pallas_attention_pool(v, vproj, q_emb, aq_emb, wq, bq, wa, ba, w_att, b_att):
    B, K, Dv = v.shape
    H = vproj.shape[-1]
    tb = _pick_tile(B, (16, 8, 4, 2, 1))

    def const2(i):
        return (0, 0)

    va, vsum = pl.pallas_call(
        _attn_pool_kernel,
        out_shape=(jax.ShapeDtypeStruct((B, Dv), jnp.float32),
                   jax.ShapeDtypeStruct((B, Dv), jnp.float32)),
        grid=(B // tb,),
        in_specs=[
            pl.BlockSpec((tb, K, H), lambda i: (i, 0, 0)),    # vproj   (batch-tiled)
            pl.BlockSpec((tb, K, Dv), lambda i: (i, 0, 0)),   # v       (batch-tiled)
            pl.BlockSpec((tb, H), lambda i: (i, 0)),          # q_emb
            pl.BlockSpec((tb, H), lambda i: (i, 0)),          # aq_emb
            pl.BlockSpec((H, H), const2),                     # wq  (resident)
            pl.BlockSpec((1, H), const2),                     # bq
            pl.BlockSpec((H, H), const2),                     # wa
            pl.BlockSpec((1, H), const2),                     # ba
            pl.BlockSpec((1, H), const2),                     # w_att
            pl.BlockSpec(memory_space=pltpu.MemorySpace.SMEM),  # b_att scalar
        ],
        out_specs=(pl.BlockSpec((tb, Dv), lambda i: (i, 0)),
                   pl.BlockSpec((tb, Dv), lambda i: (i, 0))),
        compiler_params=pltpu.CompilerParams(
            dimension_semantics=("parallel",),
            vmem_limit_bytes=_VMEM_LIMIT),
    )(vproj, v, q_emb, aq_emb, wq, bq, wa, ba, w_att, b_att)
    return va, vsum


# ----------------------------------------------------------------------------
# Kernel 4: fused tail (i_net / v_net / q_net / a_net ReLU-linears + average
#           + classifier layer 1 with ReLU), tiled over batch.
# ----------------------------------------------------------------------------
def _joint_hidden_kernel(va_ref, vs_ref, q_ref, a_ref,
                         wi_ref, bi_ref, wv_ref, bv_ref,
                         wq_ref, bq_ref, wa_ref, ba_ref,
                         w1_ref, b1_ref, hid_ref):
    def fc(x_ref, w_r, b_r):
        return jnp.maximum(
            jnp.dot(x_ref[...].astype(w_r.dtype), w_r[...],
                    preferred_element_type=jnp.float32) + b_r[...], 0.0)

    joints = (fc(va_ref, wi_ref, bi_ref)
              + fc(vs_ref, wv_ref, bv_ref)
              + fc(q_ref, wq_ref, bq_ref)
              + fc(a_ref, wa_ref, ba_ref)) * 0.25
    hid = jnp.maximum(
        jnp.dot(joints.astype(w1_ref.dtype), w1_ref[...],
                preferred_element_type=jnp.float32) + b1_ref[...], 0.0)
    hid_ref[...] = hid.astype(hid_ref.dtype)


def pallas_joint_hidden(va_emb, v_sum, q_emb, aq_emb,
                        wi, bi, wv, bv, wq, bq, wa, ba, w1, b1):
    B, Dv = va_emb.shape
    H = wq.shape[0]
    H2 = w1.shape[1]
    tb = _pick_tile(B, (128, 64, 32, 16, 8, 4, 2, 1))

    def bt(d):    # batch-tiled activation
        return pl.BlockSpec((tb, d), lambda i: (i, 0))

    def cw(r, c):  # resident weight / bias
        return pl.BlockSpec((r, c), lambda i: (0, 0))

    return pl.pallas_call(
        _joint_hidden_kernel,
        out_shape=jax.ShapeDtypeStruct((B, H2), jnp.float32),
        grid=(B // tb,),
        in_specs=[bt(Dv), bt(Dv), bt(H), bt(H),
                  cw(Dv, H), cw(1, H), cw(Dv, H), cw(1, H),
                  cw(H, H), cw(1, H), cw(H, H), cw(1, H),
                  cw(H, H2), cw(1, H2)],
        out_specs=bt(H2),
        compiler_params=pltpu.CompilerParams(
            dimension_semantics=("parallel",),
            vmem_limit_bytes=_VMEM_LIMIT),
    )(va_emb, v_sum, q_emb, aq_emb, wi, bi, wv, bv, wq, bq, wa, ba, w1, b1)


# ----------------------------------------------------------------------------
# Full BaseModel forward
# ----------------------------------------------------------------------------
def base_model_forward(params, v, q, a, *, n_classes):
    B, K, Dv = v.shape
    H = params["gru_whh"].shape[1]
    E = params["w_emb"].shape[1]
    assert H % 128 == 0, "gate slicing / lane layout assumes H is a multiple of 128"

    # Embedding lookups (gather) kept in plain JAX glue; gathered time-major
    # ([T, B, E]) by transposing only the small integer index arrays.
    w_emb = jnp.take(params["w_emb"], q.T, axis=0)     # [Tq, B, E]
    a_emb = jnp.take(params["a_emb"], a.T, axis=0)     # [Ta, B, E]
    Tq, Ta = w_emb.shape[0], a_emb.shape[0]

    # Hoisted input-side GRU matmuls: one big batched matmul each (M = T*B).
    xp_q = pallas_linear(w_emb.reshape(Tq * B, E), params["gru_wih"][0],
                         params["gru_bih"][0]).reshape(Tq, B, 3 * H)
    xp_a = pallas_linear(a_emb.reshape(Ta * B, E), params["gru_wih"][1],
                         params["gru_bih"][1]).reshape(Ta, B, 3 * H)

    # Both GRU recurrences in ONE pallas_call (grid parallel over the GRU index).
    T_max = max(Tq, Ta)
    xp_st = jnp.concatenate([
        jnp.pad(xp_q, ((0, T_max - Tq), (0, 0), (0, 0))),
        jnp.pad(xp_a, ((0, T_max - Ta), (0, 0), (0, 0)))], axis=0)   # [2*T_max, B, 3H]
    h_last = pallas_dual_gru(xp_st, params["gru_whh"], params["gru_bhh"],
                             t_q=Tq, t_a=Ta, t_max=T_max, H=H)       # [2, B, H]
    q_emb, aq_emb = h_last[0], h_last[1]

    # Image-feature projection (the only large matmul) via the tiled linear.
    vproj = pallas_linear(v.reshape(B * K, Dv), params["att_v_w"], params["att_v_b"],
                          relu=True).reshape(B, K, H)

    # Fused attention: q/a projections + logits + softmax over regions + pooling.
    va_emb, v_sum = pallas_attention_pool(
        v, vproj, q_emb, aq_emb,
        params["att_q_w"], params["att_q_b"],
        params["att_a_w"], params["att_a_b"],
        params["att_lin_w"], params["att_lin_b"])

    # Fused tail: four FCNets + average + classifier layer 1 (ReLU).
    hidden = pallas_joint_hidden(
        va_emb, v_sum, q_emb, aq_emb,
        params["i_net_w"], params["i_net_b"],
        params["v_net_w"], params["v_net_b"],
        params["q_net_w"], params["q_net_b"],
        params["a_net_w"], params["a_net_b"],
        params["cls_w1"], params["cls_b1"])

    # Final classifier: weight pre-padded once at init (no per-forward pad copies),
    # wide N tiles since this layer is pure weight streaming.
    logits = pallas_linear(hidden, params["cls_w2"], params["cls_b2"],
                           n_out=n_classes, tn=512)
    return logits


# ----------------------------------------------------------------------------
# Deterministic synthetic parameters (bf16 matmul weights, f32 biases/elementwise).
# ----------------------------------------------------------------------------
def init_params(key, *, vocab_q, vocab_a, E, H, Dv, n_classes):
    assert H % 128 == 0 and Dv % 128 == 0, "toy/production dims must be 128-aligned"
    ks = jax.random.split(key, 32)
    f32, bf16 = jnp.float32, jnp.bfloat16

    def w(k, shape, dtype=f32, scale=0.05):
        return (scale * jax.random.normal(k, shape)).astype(dtype)

    nc_pad = _round_up(n_classes, 128)

    p = {}
    p["w_emb"] = w(ks[0], (vocab_q, E))
    p["a_emb"] = w(ks[1], (vocab_a, E))
    # GRUs stacked (index 0 = question, 1 = answer); weights stored transposed
    # ([in, 3H] / [H, 3H]), gate order r|z|n, matching PyTorch nn.GRU.
    p["gru_wih"] = w(ks[2], (2, E, 3 * H), bf16)
    p["gru_whh"] = w(ks[3], (2, H, 3 * H), bf16)
    p["gru_bih"] = w(ks[4], (2, 3 * H))
    p["gru_bhh"] = w(ks[5], (2, 1, 3 * H))
    # AllAttention (av_att).
    p["att_v_w"], p["att_v_b"] = w(ks[6], (Dv, H), bf16), w(ks[7], (H,))
    p["att_q_w"], p["att_q_b"] = w(ks[8], (H, H), bf16), w(ks[9], (1, H))
    p["att_a_w"], p["att_a_b"] = w(ks[10], (H, H), bf16), w(ks[11], (1, H))
    p["att_lin_w"], p["att_lin_b"] = w(ks[12], (1, H)), w(ks[13], (1,))
    # FCNets.
    p["i_net_w"], p["i_net_b"] = w(ks[14], (Dv, H), bf16), w(ks[15], (1, H))
    p["v_net_w"], p["v_net_b"] = w(ks[16], (Dv, H), bf16), w(ks[17], (1, H))
    p["q_net_w"], p["q_net_b"] = w(ks[18], (H, H), bf16), w(ks[19], (1, H))
    p["a_net_w"], p["a_net_b"] = w(ks[20], (H, H), bf16), w(ks[21], (1, H))
    # Classifier: Linear(H -> 2H) -> ReLU -> Linear(2H -> n_classes); the last
    # layer's columns are padded to a lane multiple HERE, once, not per forward.
    p["cls_w1"], p["cls_b1"] = w(ks[22], (H, 2 * H), bf16), w(ks[23], (1, 2 * H))
    w2 = w(ks[24], (2 * H, n_classes), bf16)
    b2 = w(ks[25], (n_classes,))
    p["cls_w2"] = jnp.pad(w2, ((0, 0), (0, nc_pad - n_classes)))
    p["cls_b2"] = jnp.pad(b2, (0, nc_pad - n_classes))
    return p


if __name__ == "__main__":
    # Small shapes standing in for the module's (2048, 1024, 300, 6250) dims.
    B, K, Dv, H, E = 2, 49, 256, 128, 64
    Tq, Ta = 8, 6
    vocab_q, vocab_a, n_classes = 100, 64, 128

    key = jax.random.PRNGKey(0)
    kp, kv, kq, ka = jax.random.split(key, 4)

    params = init_params(kp, vocab_q=vocab_q, vocab_a=vocab_a, E=E, H=H,
                         Dv=Dv, n_classes=n_classes)
    v = jax.random.normal(kv, (B, K, Dv), dtype=jnp.float32)
    q = jax.random.randint(kq, (B, Tq), 0, vocab_q, dtype=jnp.int32)
    a = jax.random.randint(ka, (B, Ta), 0, vocab_a, dtype=jnp.int32)

    fwd = jax.jit(functools.partial(base_model_forward, n_classes=n_classes))
    logits = fwd(params, v, q, a)
    jax.block_until_ready(logits)
    assert logits.shape == (B, n_classes) and logits.dtype == jnp.float32
    print("KERNEL_OK")
</pallas_src>

<mosaic_0001>
module attributes {stable_mosaic.version = 11 : i64} {
  func.func @_linear_kernel(%arg0: i32, %arg1: i32, %arg2: memref<8x256xf32, #tpu.memory_space<vmem>>, %arg3: memref<256x128xbf16, #tpu.memory_space<vmem>>, %arg4: memref<1x128xf32, #tpu.memory_space<vmem>>, %arg5: memref<8x128xf32, #tpu.memory_space<vmem>>) attributes {dimension_semantics = [#tpu.dimension_semantics<parallel>, #tpu.dimension_semantics<parallel>], iteration_bounds = array<i64: 13, 1>, scalar_prefetch = 0 : i64, scratch_operands = 0 : i64, tpu.core_type = #tpu.core_type<tc>, window_params = [{transform_indices = @transform_0, window_bounds = array<i64: 8, 256>}, {transform_indices = @transform_1, window_bounds = array<i64: 256, 128>}, {transform_indices = @transform_2, window_bounds = array<i64: 1, 128>}, {transform_indices = @transform_3, window_bounds = array<i64: 8, 128>}]} {
    %c0 = arith.constant 0 : index
    %c0_0 = arith.constant 0 : index
    %0 = vector.load %arg2[%c0, %c0_0] : memref<8x256xf32, #tpu.memory_space<vmem>>, vector<8x256xf32>
    %1 = arith.truncf %0 : vector<8x256xf32> to vector<8x256xbf16>
    %c0_1 = arith.constant 0 : index
    %c0_2 = arith.constant 0 : index
    %2 = vector.load %arg3[%c0_1, %c0_2] : memref<256x128xbf16, #tpu.memory_space<vmem>>, vector<256x128xbf16>
    %cst = arith.constant dense<0.000000e+00> : vector<8x128xf32>
    %3 = tpu.matmul %1, %2, %cst {dimension_numbers = #tpu.dot_dimension_numbers<[1], [0], [0], [1], [0, 0, 1, 1], [], []>} : vector<8x256xbf16>, vector<256x128xbf16>, vector<8x128xf32> -> vector<8x128xf32>
    %c0_3 = arith.constant 0 : index
    %c0_4 = arith.constant 0 : index
    %4 = vector.load %arg4[%c0_3, %c0_4] : memref<1x128xf32, #tpu.memory_space<vmem>>, vector<1x128xf32>
    %5 = vector.broadcast %4 : vector<1x128xf32> to vector<8x128xf32>
    %6 = arith.addf %3, %5 : vector<8x128xf32>
    %cst_5 = arith.constant 0.000000e+00 : f32
    %7 = vector.broadcast %cst_5 : f32 to vector<8x128xf32>
    %8 = arith.maximumf %6, %7 : vector<8x128xf32>
    %c0_6 = arith.constant 0 : index
    %c0_7 = arith.constant 0 : index
    %9 = vector.load %arg5[%c0_6, %c0_7] : memref<8x128xf32, #tpu.memory_space<vmem>>, vector<8x128xf32>
    tpu.vector_store %arg5[%c0_6, %c0_7], %8 {strides = array<i32>} : memref<8x128xf32, #tpu.memory_space<vmem>>, vector<8x128xf32>,
    return
  }
  func.func @transform_0(%arg0: i32, %arg1: i32) -> (i32, i32) {
    %c0_i32 = arith.constant 0 : i32
    %c0_i32_0 = arith.constant 0 : i32
    return %arg0, %c0_i32 : i32, i32
  }
  func.func @transform_1(%arg0: i32, %arg1: i32) -> (i32, i32) {
    %c0_i32 = arith.constant 0 : i32
    %c0_i32_0 = arith.constant 0 : i32
    return %c0_i32, %arg1 : i32, i32
  }
  func.func @transform_2(%arg0: i32, %arg1: i32) -> (i32, i32) {
    %c0_i32 = arith.constant 0 : i32
    %c0_i32_0 = arith.constant 0 : i32
    return %c0_i32, %arg1 : i32, i32
  }
  func.func @transform_3(%arg0: i32, %arg1: i32) -> (i32, i32) {
    %c0_i32 = arith.constant 0 : i32
    return %arg0, %arg1 : i32, i32
  }
}

module attributes {stable_mosaic.version = 11 : i64} {
  func.func @_linear_kernel(%arg0: i32, %arg1: i32, %arg2: memref<16x64xf32, #tpu.memory_space<vmem>>, %arg3: memref<64x128xbf16, #tpu.memory_space<vmem>>, %arg4: memref<1x128xf32, #tpu.memory_space<vmem>>, %arg5: memref<16x128xf32, #tpu.memory_space<vmem>>) attributes {dimension_semantics = [#tpu.dimension_semantics<parallel>, #tpu.dimension_semantics<parallel>], iteration_bounds = array<i64: 1, 3>, scalar_prefetch = 0 : i64, scratch_operands = 0 : i64, tpu.core_type = #tpu.core_type<tc>, window_params = [{transform_indices = @transform_0, window_bounds = array<i64: 16, 64>}, {transform_indices = @transform_1, window_bounds = array<i64: 64, 128>}, {transform_indices = @transform_2, window_bounds = array<i64: 1, 128>}, {transform_indices = @transform_3, window_bounds = array<i64: 16, 128>}]} {
    %c0 = arith.constant 0 : index
    %c0_0 = arith.constant 0 : index
    %0 = vector.load %arg2[%c0, %c0_0] : memref<16x64xf32, #tpu.memory_space<vmem>>, vector<16x64xf32>
    %1 = arith.truncf %0 : vector<16x64xf32> to vector<16x64xbf16>
    %c0_1 = arith.constant 0 : index
    %c0_2 = arith.constant 0 : index
    %2 = vector.load %arg3[%c0_1, %c0_2] : memref<64x128xbf16, #tpu.memory_space<vmem>>, vector<64x128xbf16>
    %cst = arith.constant dense<0.000000e+00> : vector<16x128xf32>
    %3 = tpu.matmul %1, %2, %cst {dimension_numbers = #tpu.dot_dimension_numbers<[1], [0], [0], [1], [0, 0, 1, 1], [], []>} : vector<16x64xbf16>, vector<64x128xbf16>, vector<16x128xf32> -> vector<16x128xf32>
    %c0_3 = arith.constant 0 : index
    %c0_4 = arith.constant 0 : index
    %4 = vector.load %arg4[%c0_3, %c0_4] : memref<1x128xf32, #tpu.memory_space<vmem>>, vector<1x128xf32>
    %5 = vector.broadcast %4 : vector<1x128xf32> to vector<16x128xf32>
    %6 = arith.addf %3, %5 : vector<16x128xf32>
    %c0_5 = arith.constant 0 : index
    %c0_6 = arith.constant 0 : index
    %7 = vector.load %arg5[%c0_5, %c0_6] : memref<16x128xf32, #tpu.memory_space<vmem>>, vector<16x128xf32>
    tpu.vector_store %arg5[%c0_5, %c0_6], %6 {strides = array<i32>} : memref<16x128xf32, #tpu.memory_space<vmem>>, vector<16x128xf32>,
    return
  }
  func.func @transform_0(%arg0: i32, %arg1: i32) -> (i32, i32) {
    %c0_i32 = arith.constant 0 : i32
    %c0_i32_0 = arith.constant 0 : i32
    return %arg0, %c0_i32 : i32, i32
  }
  func.func @transform_1(%arg0: i32, %arg1: i32) -> (i32, i32) {
    %c0_i32 = arith.constant 0 : i32
    %c0_i32_0 = arith.constant 0 : i32
    return %c0_i32, %arg1 : i32, i32
  }
  func.func @transform_2(%arg0: i32, %arg1: i32) -> (i32, i32) {
    %c0_i32 = arith.constant 0 : i32
    %c0_i32_0 = arith.constant 0 : i32
    return %c0_i32, %arg1 : i32, i32
  }
  func.func @transform_3(%arg0: i32, %arg1: i32) -> (i32, i32) {
    %c0_i32 = arith.constant 0 : i32
    return %arg0, %arg1 : i32, i32
  }
}

module attributes {stable_mosaic.version = 11 : i64} {
  func.func @_dual_gru_kernel(%arg0: i32, %arg1: i32, %arg2: memref<1x2x384xf32, #tpu.memory_space<vmem>>, %arg3: memref<1x128x384xbf16, #tpu.memory_space<vmem>>, %arg4: memref<1x1x384xf32, #tpu.memory_space<vmem>>, %arg5: memref<1x2x128xf32, #tpu.memory_space<vmem>>, %arg6: memref<2x128xf32, #tpu.memory_space<vmem>>) attributes {dimension_semantics = [#tpu.dimension_semantics<parallel>, #tpu.dimension_semantics<arbitrary>], iteration_bounds = array<i64: 2, 8>, scalar_prefetch = 0 : i64, scratch_operands = 1 : i64, tpu.core_type = #tpu.core_type<tc>, window_params = [{transform_indices = @transform_0, window_bounds = array<i64: 1, 2, 384>}, {transform_indices = @transform_1, window_bounds = array<i64: 1, 128, 384>}, {transform_indices = @transform_2, window_bounds = array<i64: 1, 1, 384>}, {transform_indices = @transform_3, window_bounds = array<i64: 1, 2, 128>}]} {
    %c0_i32 = arith.constant 0 : i32
    %0 = arith.cmpi eq, %arg1, %c0_i32 : i32
    %1 = arith.extui %0 : i1 to i32
    %c0_i32_0 = arith.constant 0 : i32
    %2 = arith.cmpi ne, %1, %c0_i32_0 : i32
    scf.if %2 {
      %cst = arith.constant 0.000000e+00 : f32
      %8 = vector.broadcast %cst : f32 to vector<2x128xf32>
      %c0 = arith.constant 0 : index
      %c0_3 = arith.constant 0 : index
      %9 = vector.load %arg6[%c0, %c0_3] : memref<2x128xf32, #tpu.memory_space<vmem>>, vector<2x128xf32>
      tpu.vector_store %arg6[%c0, %c0_3], %8 {strides = array<i32>} : memref<2x128xf32, #tpu.memory_space<vmem>>, vector<2x128xf32>,
    } else {
    }
    %c0_i32_1 = arith.constant 0 : i32
    %3 = arith.cmpi eq, %arg0, %c0_i32_1 : i32
    %c8_i32 = arith.constant 8 : i32
    %c6_i32 = arith.constant 6 : i32
    %4 = arith.select %3, %c8_i32, %c6_i32 : i32
    %5 = arith.cmpi slt, %arg1, %4 : i32
    %6 = arith.extui %5 : i1 to i32
    %c0_i32_2 = arith.constant 0 : i32
    %7 = arith.cmpi ne, %6, %c0_i32_2 : i32
    scf.if %7 {
      %c0 = arith.constant 0 : index
      %c0_3 = arith.constant 0 : index
      %8 = vector.load %arg6[%c0, %c0_3] : memref<2x128xf32, #tpu.memory_space<vmem>>, vector<2x128xf32>
      %c0_4 = arith.constant 0 : index
      %c0_5 = arith.constant 0 : index
      %c0_6 = arith.constant 0 : index
      %9 = vector.load %arg2[%c0_4, %c0_5, %c0_6] : memref<1x2x384xf32, #tpu.memory_space<vmem>>, vector<1x2x384xf32>
      %10 = vector.shape_cast %9 : vector<1x2x384xf32> to vector<2x384xf32>
      %11 = arith.truncf %8 : vector<2x128xf32> to vector<2x128xbf16>
      %c0_7 = arith.constant 0 : index
      %c0_8 = arith.constant 0 : index
      %c0_9 = arith.constant 0 : index
      %12 = vector.load %arg3[%c0_7, %c0_8, %c0_9] : memref<1x128x384xbf16, #tpu.memory_space<vmem>>, vector<1x128x384xbf16>
      %13 = vector.shape_cast %12 : vector<1x128x384xbf16> to vector<128x384xbf16>
      %cst = arith.constant dense<0.000000e+00> : vector<2x384xf32>
      %14 = tpu.matmul %11, %13, %cst {dimension_numbers = #tpu.dot_dimension_numbers<[1], [0], [0], [1], [0, 0, 1, 1], [], []>} : vector<2x128xbf16>, vector<128x384xbf16>, vector<2x384xf32> -> vector<2x384xf32>
      %c0_10 = arith.constant 0 : index
      %c0_11 = arith.constant 0 : index
      %c0_12 = arith.constant 0 : index
      %15 = vector.load %arg4[%c0_10, %c0_11, %c0_12] : memref<1x1x384xf32, #tpu.memory_space<vmem>>, vector<1x1x384xf32>
      %16 = vector.shape_cast %15 : vector<1x1x384xf32> to vector<1x384xf32>
      %17 = vector.broadcast %16 : vector<1x384xf32> to vector<2x384xf32>
      %18 = arith.addf %14, %17 : vector<2x384xf32>
      %19 = vector.extract_strided_slice %10 {offsets = [0, 0], sizes = [2, 128], strides = [1, 1]} : vector<2x384xf32> to vector<2x128xf32>
      %20 = vector.extract_strided_slice %10 {offsets = [0, 128], sizes = [2, 128], strides = [1, 1]} : vector<2x384xf32> to vector<2x128xf32>
      %21 = vector.extract_strided_slice %10 {offsets = [0, 256], sizes = [2, 128], strides = [1, 1]} : vector<2x384xf32> to vector<2x128xf32>
      %22 = vector.extract_strided_slice %18 {offsets = [0, 0], sizes = [2, 128], strides = [1, 1]} : vector<2x384xf32> to vector<2x128xf32>
      %23 = vector.extract_strided_slice %18 {offsets = [0, 128], sizes = [2, 128], strides = [1, 1]} : vector<2x384xf32> to vector<2x128xf32>
      %24 = vector.extract_strided_slice %18 {offsets = [0, 256], sizes = [2, 128], strides = [1, 1]} : vector<2x384xf32> to vector<2x128xf32>
      %25 = arith.addf %19, %22 : vector<2x128xf32>
      %26 = arith.negf %25 : vector<2x128xf32>
      %27 = math.exp %26 : vector<2x128xf32>
      %cst_13 = arith.constant 1.000000e+00 : f32
      %28 = vector.broadcast %cst_13 : f32 to vector<2x128xf32>
      %29 = arith.addf %28, %27 : vector<2x128xf32>
      %30 = arith.divf %28, %29 : vector<2x128xf32>
      %31 = arith.addf %20, %23 : vector<2x128xf32>
      %32 = arith.negf %31 : vector<2x128xf32>
      %33 = math.exp %32 : vector<2x128xf32>
      %cst_14 = arith.constant 1.000000e+00 : f32
      %34 = vector.broadcast %cst_14 : f32 to vector<2x128xf32>
      %35 = arith.addf %34, %33 : vector<2x128xf32>
      %36 = arith.divf %34, %35 : vector<2x128xf32>
      %37 = arith.mulf %30, %24 : vector<2x128xf32>
      %38 = arith.addf %21, %37 : vector<2x128xf32>
      %39 = math.tanh %38 : vector<2x128xf32>
      %cst_15 = arith.constant 1.000000e+00 : f32
      %40 = vector.broadcast %cst_15 : f32 to vector<2x128xf32>
      %41 = arith.subf %40, %36 : vector<2x128xf32>
      %42 = arith.mulf %41, %39 : vector<2x128xf32>
      %43 = arith.mulf %36, %8 : vector<2x128xf32>
      %44 = arith.addf %42, %43 : vector<2x128xf32>
      %c0_16 = arith.constant 0 : index
      %c0_17 = arith.constant 0 : index
      %45 = vector.load %arg6[%c0_16, %c0_17] : memref<2x128xf32, #tpu.memory_space<vmem>>, vector<2x128xf32>
      tpu.vector_store %arg6[%c0_16, %c0_17], %44 {strides = array<i32>} : memref<2x128xf32, #tpu.memory_space<vmem>>, vector<2x128xf32>,
      %c0_18 = arith.constant 0 : index
      %c0_19 = arith.constant 0 : index
      %c0_20 = arith.constant 0 : index
      %46 = vector.load %arg5[%c0_18, %c0_19, %c0_20] : memref<1x2x128xf32, #tpu.memory_space<vmem>>, vector<1x2x128xf32>
      %47 = vector.shape_cast %46 : vector<1x2x128xf32> to vector<2x128xf32>
      %48 = vector.shape_cast %44 : vector<2x128xf32> to vector<1x2x128xf32>
      tpu.vector_store %arg5[%c0_18, %c0_19, %c0_20], %48 {strides = array<i32>} : memref<1x2x128xf32, #tpu.memory_space<vmem>>, vector<1x2x128xf32>,
    } else {
    }
    return
  }
  func.func @transform_0(%arg0: i32, %arg1: i32) -> (i32, i32, i32) {
    %c8_i32 = arith.constant 8 : i32
    %0 = arith.muli %arg0, %c8_i32 : i32
    %1 = arith.addi %0, %arg1 : i32
    %c0_i32 = arith.constant 0 : i32
    %c0_i32_0 = arith.constant 0 : i32
    %c0_i32_1 = arith.constant 0 : i32
    return %1, %c0_i32, %c0_i32_0 : i32, i32, i32
  }
  func.func @transform_1(%arg0: i32, %arg1: i32) -> (i32, i32, i32) {
    %c0_i32 = arith.constant 0 : i32
    %c0_i32_0 = arith.constant 0 : i32
    %c0_i32_1 = arith.constant 0 : i32
    return %arg0, %c0_i32, %c0_i32_0 : i32, i32, i32
  }
  func.func @transform_2(%arg0: i32, %arg1: i32) -> (i32, i32, i32) {
    %c0_i32 = arith.constant 0 : i32
    %c0_i32_0 = arith.constant 0 : i32
    %c0_i32_1 = arith.constant 0 : i32
    return %arg0, %c0_i32, %c0_i32_0 : i32, i32, i32
  }
  func.func @transform_3(%arg0: i32, %arg1: i32) -> (i32, i32, i32) {
    %c0_i32 = arith.constant 0 : i32
    %c0_i32_0 = arith.constant 0 : i32
    %c0_i32_1 = arith.constant 0 : i32
    return %arg0, %c0_i32, %c0_i32_0 : i32, i32, i32
  }
}

module attributes {stable_mosaic.version = 11 : i64} {
  func.func @_joint_hidden_kernel(%arg0: i32, %arg1: memref<2x256xf32, #tpu.memory_space<vmem>>, %arg2: memref<2x256xf32, #tpu.memory_space<vmem>>, %arg3: memref<2x128xf32, #tpu.memory_space<vmem>>, %arg4: memref<2x128xf32, #tpu.memory_space<vmem>>, %arg5: memref<256x128xbf16, #tpu.memory_space<vmem>>, %arg6: memref<1x128xf32, #tpu.memory_space<vmem>>, %arg7: memref<256x128xbf16, #tpu.memory_space<vmem>>, %arg8: memref<1x128xf32, #tpu.memory_space<vmem>>, %arg9: memref<128x128xbf16, #tpu.memory_space<vmem>>, %arg10: memref<1x128xf32, #tpu.memory_space<vmem>>, %arg11: memref<128x128xbf16, #tpu.memory_space<vmem>>, %arg12: memref<1x128xf32, #tpu.memory_space<vmem>>, %arg13: memref<128x256xbf16, #tpu.memory_space<vmem>>, %arg14: memref<1x256xf32, #tpu.memory_space<vmem>>, %arg15: memref<2x256xf32, #tpu.memory_space<vmem>>) attributes {dimension_semantics = [#tpu.dimension_semantics<parallel>], iteration_bounds = array<i64: 1>, scalar_prefetch = 0 : i64, scratch_operands = 0 : i64, tpu.core_type = #tpu.core_type<tc>, window_params = [{transform_indices = @transform_0, window_bounds = array<i64: 2, 256>}, {transform_indices = @transform_1, window_bounds = array<i64: 2, 256>}, {transform_indices = @transform_2, window_bounds = array<i64: 2, 128>}, {transform_indices = @transform_3, window_bounds = array<i64: 2, 128>}, {pipeline_mode = #tpu.pipeline_mode<synchronous>, transform_indices = @transform_4, window_bounds = array<i64: 256, 128>}, {pipeline_mode = #tpu.pipeline_mode<synchronous>, transform_indices = @transform_5, window_bounds = array<i64: 1, 128>}, {pipeline_mode = #tpu.pipeline_mode<synchronous>, transform_indices = @transform_6, window_bounds = array<i64: 256, 128>}, {pipeline_mode = #tpu.pipeline_mode<synchronous>, transform_indices = @transform_7, window_bounds = array<i64: 1, 128>}, {pipeline_mode = #tpu.pipeline_mode<synchronous>, transform_indices = @transform_8, window_bounds = array<i64: 128, 128>}, {pipeline_mode = #tpu.pipeline_mode<synchronous>, transform_indices = @transform_9, window_bounds = array<i64: 1, 128>}, {pipeline_mode = #tpu.pipeline_mode<synchronous>, transform_indices = @transform_10, window_bounds = array<i64: 128, 128>}, {pipeline_mode = #tpu.pipeline_mode<synchronous>, transform_indices = @transform_11, window_bounds = array<i64: 1, 128>}, {pipeline_mode = #tpu.pipeline_mode<synchronous>, transform_indices = @transform_12, window_bounds = array<i64: 128, 256>}, {pipeline_mode = #tpu.pipeline_mode<synchronous>, transform_indices = @transform_13, window_bounds = array<i64: 1, 256>}, {transform_indices = @transform_14, window_bounds = array<i64: 2, 256>}]} {
    %c0 = arith.constant 0 : index
    %c0_0 = arith.constant 0 : index
    %0 = vector.load %arg1[%c0, %c0_0] : memref<2x256xf32, #tpu.memory_space<vmem>>, vector<2x256xf32>
    %1 = arith.truncf %0 : vector<2x256xf32> to vector<2x256xbf16>
    %c0_1 = arith.constant 0 : index
    %c0_2 = arith.constant 0 : index
    %2 = vector.load %arg5[%c0_1, %c0_2] : memref<256x128xbf16, #tpu.memory_space<vmem>>, vector<256x128xbf16>
    %cst = arith.constant dense<0.000000e+00> : vector<2x128xf32>
    %3 = tpu.matmul %1, %2, %cst {dimension_numbers = #tpu.dot_dimension_numbers<[1], [0], [0], [1], [0, 0, 1, 1], [], []>} : vector<2x256xbf16>, vector<256x128xbf16>, vector<2x128xf32> -> vector<2x128xf32>
    %c0_3 = arith.constant 0 : index
    %c0_4 = arith.constant 0 : index
    %4 = vector.load %arg6[%c0_3, %c0_4] : memref<1x128xf32, #tpu.memory_space<vmem>>, vector<1x128xf32>
    %5 = vector.broadcast %4 : vector<1x128xf32> to vector<2x128xf32>
    %6 = arith.addf %3, %5 : vector<2x128xf32>
    %cst_5 = arith.constant 0.000000e+00 : f32
    %7 = vector.broadcast %cst_5 : f32 to vector<2x128xf32>
    %8 = arith.maximumf %6, %7 : vector<2x128xf32>
    %c0_6 = arith.constant 0 : index
    %c0_7 = arith.constant 0 : index
    %9 = vector.load %arg2[%c0_6, %c0_7] : memref<2x256xf32, #tpu.memory_space<vmem>>, vector<2x256xf32>
    %10 = arith.truncf %9 : vector<2x256xf32> to vector<2x256xbf16>
    %c0_8 = arith.constant 0 : index
    %c0_9 = arith.constant 0 : index
    %11 = vector.load %arg7[%c0_8, %c0_9] : memref<256x128xbf16, #tpu.memory_space<vmem>>, vector<256x128xbf16>
    %cst_10 = arith.constant dense<0.000000e+00> : vector<2x128xf32>
    %12 = tpu.matmul %10, %11, %cst_10 {dimension_numbers = #tpu.dot_dimension_numbers<[1], [0], [0], [1], [0, 0, 1, 1], [], []>} : vector<2x256xbf16>, vector<256x128xbf16>, vector<2x128xf32> -> vector<2x128xf32>
    %c0_11 = arith.constant 0 : index
    %c0_12 = arith.constant 0 : index
    %13 = vector.load %arg8[%c0_11, %c0_12] : memref<1x128xf32, #tpu.memory_space<vmem>>, vector<1x128xf32>
    %14 = vector.broadcast %13 : vector<1x128xf32> to vector<2x128xf32>
    %15 = arith.addf %12, %14 : vector<2x128xf32>
    %cst_13 = arith.constant 0.000000e+00 : f32
    %16 = vector.broadcast %cst_13 : f32 to vector<2x128xf32>
    %17 = arith.maximumf %15, %16 : vector<2x128xf32>
    %18 = arith.addf %8, %17 : vector<2x128xf32>
    %c0_14 = arith.constant 0 : index
    %c0_15 = arith.constant 0 : index
    %19 = vector.load %arg3[%c0_14, %c0_15] : memref<2x128xf32, #tpu.memory_space<vmem>>, vector<2x128xf32>
    %20 = arith.truncf %19 : vector<2x128xf32> to vector<2x128xbf16>
    %c0_16 = arith.constant 0 : index
    %c0_17 = arith.constant 0 : index
    %21 = vector.load %arg9[%c0_16, %c0_17] : memref<128x128xbf16, #tpu.memory_space<vmem>>, vector<128x128xbf16>
    %cst_18 = arith.constant dense<0.000000e+00> : vector<2x128xf32>
    %22 = tpu.matmul %20, %21, %cst_18 {dimension_numbers = #tpu.dot_dimension_numbers<[1], [0], [0], [1], [0, 0, 1, 1], [], []>} : vector<2x128xbf16>, vector<128x128xbf16>, vector<2x128xf32> -> vector<2x128xf32>
    %c0_19 = arith.constant 0 : index
    %c0_20 = arith.constant 0 : index
    %23 = vector.load %arg10[%c0_19, %c0_20] : memref<1x128xf32, #tpu.memory_space<vmem>>, vector<1x128xf32>
    %24 = vector.broadcast %23 : vector<1x128xf32> to vector<2x128xf32>
    %25 = arith.addf %22, %24 : vector<2x128xf32>
    %cst_21 = arith.constant 0.000000e+00 : f32
    %26 = vector.broadcast %cst_21 : f32 to vector<2x128xf32>
    %27 = arith.maximumf %25, %26 : vector<2x128xf32>
    %28 = arith.addf %18, %27 : vector<2x128xf32>
    %c0_22 = arith.constant 0 : index
    %c0_23 = arith.constant 0 : index
    %29 = vector.load %arg4[%c0_22, %c0_23] : memref<2x128xf32, #tpu.memory_space<vmem>>, vector<2x128xf32>
    %30 = arith.truncf %29 : vector<2x128xf32> to vector<2x128xbf16>
    %c0_24 = arith.constant 0 : index
    %c0_25 = arith.constant 0 : index
    %31 = vector.load %arg11[%c0_24, %c0_25] : memref<128x128xbf16, #tpu.memory_space<vmem>>, vector<128x128xbf16>
    %cst_26 = arith.constant dense<0.000000e+00> : vector<2x128xf32>
    %32 = tpu.matmul %30, %31, %cst_26 {dimension_numbers = #tpu.dot_dimension_numbers<[1], [0], [0], [1], [0, 0, 1, 1], [], []>} : vector<2x128xbf16>, vector<128x128xbf16>, vector<2x128xf32> -> vector<2x128xf32>
    %c0_27 = arith.constant 0 : index
    %c0_28 = arith.constant 0 : index
    %33 = vector.load %arg12[%c0_27, %c0_28] : memref<1x128xf32, #tpu.memory_space<vmem>>, vector<1x128xf32>
    %34 = vector.broadcast %33 : vector<1x128xf32> to vector<2x128xf32>
    %35 = arith.addf %32, %34 : vector<2x128xf32>
    %cst_29 = arith.constant 0.000000e+00 : f32
    %36 = vector.broadcast %cst_29 : f32 to vector<2x128xf32>
    %37 = arith.maximumf %35, %36 : vector<2x128xf32>
    %38 = arith.addf %28, %37 : vector<2x128xf32>
    %cst_30 = arith.constant 2.500000e-01 : f32
    %39 = vector.broadcast %cst_30 : f32 to vector<2x128xf32>
    %40 = arith.mulf %38, %39 : vector<2x128xf32>
    %41 = arith.truncf %40 : vector<2x128xf32> to vector<2x128xbf16>
    %c0_31 = arith.constant 0 : index
    %c0_32 = arith.constant 0 : index
    %42 = vector.load %arg13[%c0_31, %c0_32] : memref<128x256xbf16, #tpu.memory_space<vmem>>, vector<128x256xbf16>
    %cst_33 = arith.constant dense<0.000000e+00> : vector<2x256xf32>
    %43 = tpu.matmul %41, %42, %cst_33 {dimension_numbers = #tpu.dot_dimension_numbers<[1], [0], [0], [1], [0, 0, 1, 1], [], []>} : vector<2x128xbf16>, vector<128x256xbf16>, vector<2x256xf32> -> vector<2x256xf32>
    %c0_34 = arith.constant 0 : index
    %c0_35 = arith.constant 0 : index
    %44 = vector.load %arg14[%c0_34, %c0_35] : memref<1x256xf32, #tpu.memory_space<vmem>>, vector<1x256xf32>
    %45 = vector.broadcast %44 : vector<1x256xf32> to vector<2x256xf32>
    %46 = arith.addf %43, %45 : vector<2x256xf32>
    %cst_36 = arith.constant 0.000000e+00 : f32
    %47 = vector.broadcast %cst_36 : f32 to vector<2x256xf32>
    %48 = arith.maximumf %46, %47 : vector<2x256xf32>
    %c0_37 = arith.constant 0 : index
    %c0_38 = arith.constant 0 : index
    %49 = vector.load %arg15[%c0_37, %c0_38] : memref<2x256xf32, #tpu.memory_space<vmem>>, vector<2x256xf32>
    tpu.vector_store %arg15[%c0_37, %c0_38], %48 {strides = array<i32>} : memref<2x256xf32, #tpu.memory_space<vmem>>, vector<2x256xf32>,
    return
  }
  func.func @transform_0(%arg0: i32) -> (i32, i32) {
    %c0_i32 = arith.constant 0 : i32
    %c0_i32_0 = arith.constant 0 : i32
    return %arg0, %c0_i32 : i32, i32
  }
  func.func @transform_1(%arg0: i32) -> (i32, i32) {
    %c0_i32 = arith.constant 0 : i32
    %c0_i32_0 = arith.constant 0 : i32
    return %arg0, %c0_i32 : i32, i32
  }
  func.func @transform_2(%arg0: i32) -> (i32, i32) {
    %c0_i32 = arith.constant 0 : i32
    %c0_i32_0 = arith.constant 0 : i32
    return %arg0, %c0_i32 : i32, i32
  }
  func.func @transform_3(%arg0: i32) -> (i32, i32) {
    %c0_i32 = arith.constant 0 : i32
    %c0_i32_0 = arith.constant 0 : i32
    return %arg0, %c0_i32 : i32, i32
  }
  func.func @transform_4(%arg0: i32) -> (i32, i32) {
    %c0_i32 = arith.constant 0 : i32
    %c0_i32_0 = arith.constant 0 : i32
    %c0_i32_1 = arith.constant 0 : i32
    return %c0_i32, %c0_i32_0 : i32, i32
  }
  func.func @transform_5(%arg0: i32) -> (i32, i32) {
    %c0_i32 = arith.constant 0 : i32
    %c0_i32_0 = arith.constant 0 : i32
    %c0_i32_1 = arith.constant 0 : i32
    return %c0_i32, %c0_i32_0 : i32, i32
  }
  func.func @transform_6(%arg0: i32) -> (i32, i32) {
    %c0_i32 = arith.constant 0 : i32
    %c0_i32_0 = arith.constant 0 : i32
    %c0_i32_1 = arith.constant 0 : i32
    return %c0_i32, %c0_i32_0 : i32, i32
  }
  func.func @transform_7(%arg0: i32) -> (i32, i32) {
    %c0_i32 = arith.constant 0 : i32
    %c0_i32_0 = arith.constant 0 : i32
    %c0_i32_1 = arith.constant 0 : i32
    return %c0_i32, %c0_i32_0 : i32, i32
  }
  func.func @transform_8(%arg0: i32) -> (i32, i32) {
    %c0_i32 = arith.constant 0 : i32
    %c0_i32_0 = arith.constant 0 : i32
    %c0_i32_1 = arith.constant 0 : i32
    return %c0_i32, %c0_i32_0 : i32, i32
  }
  func.func @transform_9(%arg0: i32) -> (i32, i32) {
    %c0_i32 = arith.constant 0 : i32
    %c0_i32_0 = arith.constant 0 : i32
    %c0_i32_1 = arith.constant 0 : i32
    return %c0_i32, %c0_i32_0 : i32, i32
  }
  func.func @transform_10(%arg0: i32) -> (i32, i32) {
    %c0_i32 = arith.constant 0 : i32
    %c0_i32_0 = arith.constant 0 : i32
    %c0_i32_1 = arith.constant 0 : i32
    return %c0_i32, %c0_i32_0 : i32, i32
  }
  func.func @transform_11(%arg0: i32) -> (i32, i32) {
    %c0_i32 = arith.constant 0 : i32
    %c0_i32_0 = arith.constant 0 : i32
    %c0_i32_1 = arith.constant 0 : i32
    return %c0_i32, %c0_i32_0 : i32, i32
  }
  func.func @transform_12(%arg0: i32) -> (i32, i32) {
    %c0_i32 = arith.constant 0 : i32
    %c0_i32_0 = arith.constant 0 : i32
    %c0_i32_1 = arith.constant 0 : i32
    return %c0_i32, %c0_i32_0 : i32, i32
  }
  func.func @transform_13(%arg0: i32) -> (i32, i32) {
    %c0_i32 = arith.constant 0 : i32
    %c0_i32_0 = arith.constant 0 : i32
    %c0_i32_1 = arith.constant 0 : i32
    return %c0_i32, %c0_i32_0 : i32, i32
  }
  func.func @transform_14(%arg0: i32) -> (i32, i32) {
    %c0_i32 = arith.constant 0 : i32
    %c0_i32_0 = arith.constant 0 : i32
    return %arg0, %c0_i32 : i32, i32
  }
}

module attributes {stable_mosaic.version = 11 : i64} {
  func.func @_attn_pool_kernel(%arg0: i32, %arg1: memref<2x49x128xf32, #tpu.memory_space<vmem>>, %arg2: memref<2x49x256xf32, #tpu.memory_space<vmem>>, %arg3: memref<2x128xf32, #tpu.memory_space<vmem>>, %arg4: memref<2x128xf32, #tpu.memory_space<vmem>>, %arg5: memref<128x128xbf16, #tpu.memory_space<vmem>>, %arg6: memref<1x128xf32, #tpu.memory_space<vmem>>, %arg7: memref<128x128xbf16, #tpu.memory_space<vmem>>, %arg8: memref<1x128xf32, #tpu.memory_space<vmem>>, %arg9: memref<1x128xf32, #tpu.memory_space<vmem>>, %arg10: memref<1xf32, #tpu.memory_space<smem>>, %arg11: memref<2x256xf32, #tpu.memory_space<vmem>>, %arg12: memref<2x256xf32, #tpu.memory_space<vmem>>) attributes {dimension_semantics = [#tpu.dimension_semantics<parallel>], iteration_bounds = array<i64: 1>, scalar_prefetch = 0 : i64, scratch_operands = 0 : i64, tpu.core_type = #tpu.core_type<tc>, window_params = [{transform_indices = @transform_0, window_bounds = array<i64: 2, 49, 128>}, {transform_indices = @transform_1, window_bounds = array<i64: 2, 49, 256>}, {transform_indices = @transform_2, window_bounds = array<i64: 2, 128>}, {transform_indices = @transform_3, window_bounds = array<i64: 2, 128>}, {pipeline_mode = #tpu.pipeline_mode<synchronous>, transform_indices = @transform_4, window_bounds = array<i64: 128, 128>}, {pipeline_mode = #tpu.pipeline_mode<synchronous>, transform_indices = @transform_5, window_bounds = array<i64: 1, 128>}, {pipeline_mode = #tpu.pipeline_mode<synchronous>, transform_indices = @transform_6, window_bounds = array<i64: 128, 128>}, {pipeline_mode = #tpu.pipeline_mode<synchronous>, transform_indices = @transform_7, window_bounds = array<i64: 1, 128>}, {pipeline_mode = #tpu.pipeline_mode<synchronous>, transform_indices = @transform_8, window_bounds = array<i64: 1, 128>}, {transform_indices = @transform_9, window_bounds = array<i64: 1>}, {transform_indices = @transform_10, window_bounds = array<i64: 2, 256>}, {transform_indices = @transform_11, window_bounds = array<i64: 2, 256>}]} {
    %c0 = arith.constant 0 : index
    %c0_0 = arith.constant 0 : index
    %0 = vector.load %arg3[%c0, %c0_0] : memref<2x128xf32, #tpu.memory_space<vmem>>, vector<2x128xf32>
    %1 = arith.truncf %0 : vector<2x128xf32> to vector<2x128xbf16>
    %c0_1 = arith.constant 0 : index
    %c0_2 = arith.constant 0 : index
    %2 = vector.load %arg5[%c0_1, %c0_2] : memref<128x128xbf16, #tpu.memory_space<vmem>>, vector<128x128xbf16>
    %cst = arith.constant dense<0.000000e+00> : vector<2x128xf32>
    %3 = tpu.matmul %1, %2, %cst {dimension_numbers = #tpu.dot_dimension_numbers<[1], [0], [0], [1], [0, 0, 1, 1], [], []>} : vector<2x128xbf16>, vector<128x128xbf16>, vector<2x128xf32> -> vector<2x128xf32>
    %c0_3 = arith.constant 0 : index
    %c0_4 = arith.constant 0 : index
    %4 = vector.load %arg6[%c0_3, %c0_4] : memref<1x128xf32, #tpu.memory_space<vmem>>, vector<1x128xf32>
    %5 = vector.broadcast %4 : vector<1x128xf32> to vector<2x128xf32>
    %6 = arith.addf %3, %5 : vector<2x128xf32>
    %cst_5 = arith.constant 0.000000e+00 : f32
    %7 = vector.broadcast %cst_5 : f32 to vector<2x128xf32>
    %8 = arith.maximumf %6, %7 : vector<2x128xf32>
    %c0_6 = arith.constant 0 : index
    %c0_7 = arith.constant 0 : index
    %9 = vector.load %arg4[%c0_6, %c0_7] : memref<2x128xf32, #tpu.memory_space<vmem>>, vector<2x128xf32>
    %10 = arith.truncf %9 : vector<2x128xf32> to vector<2x128xbf16>
    %c0_8 = arith.constant 0 : index
    %c0_9 = arith.constant 0 : index
    %11 = vector.load %arg7[%c0_8, %c0_9] : memref<128x128xbf16, #tpu.memory_space<vmem>>, vector<128x128xbf16>
    %cst_10 = arith.constant dense<0.000000e+00> : vector<2x128xf32>
    %12 = tpu.matmul %10, %11, %cst_10 {dimension_numbers = #tpu.dot_dimension_numbers<[1], [0], [0], [1], [0, 0, 1, 1], [], []>} : vector<2x128xbf16>, vector<128x128xbf16>, vector<2x128xf32> -> vector<2x128xf32>
    %c0_11 = arith.constant 0 : index
    %c0_12 = arith.constant 0 : index
    %13 = vector.load %arg8[%c0_11, %c0_12] : memref<1x128xf32, #tpu.memory_space<vmem>>, vector<1x128xf32>
    %14 = vector.broadcast %13 : vector<1x128xf32> to vector<2x128xf32>
    %15 = arith.addf %12, %14 : vector<2x128xf32>
    %cst_13 = arith.constant 0.000000e+00 : f32
    %16 = vector.broadcast %cst_13 : f32 to vector<2x128xf32>
    %17 = arith.maximumf %15, %16 : vector<2x128xf32>
    %18 = arith.mulf %8, %17 : vector<2x128xf32>
    %c0_14 = arith.constant 0 : index
    %c0_15 = arith.constant 0 : index
    %19 = vector.load %arg9[%c0_14, %c0_15] : memref<1x128xf32, #tpu.memory_space<vmem>>, vector<1x128xf32>
    %20 = vector.broadcast %19 : vector<1x128xf32> to vector<2x128xf32>
    %21 = arith.mulf %18, %20 : vector<2x128xf32>
    %c0_16 = arith.constant 0 : index
    %c0_17 = arith.constant 0 : index
    %c0_18 = arith.constant 0 : index
    %22 = vector.load %arg1[%c0_16, %c0_17, %c0_18] : memref<2x49x128xf32, #tpu.memory_space<vmem>>, vector<2x49x128xf32>
    %23 = vector.shape_cast %21 : vector<2x128xf32> to vector<2x1x128xf32>
    %24 = vector.broadcast %23 : vector<2x1x128xf32> to vector<2x49x128xf32>
    %25 = arith.mulf %22, %24 : vector<2x49x128xf32>
    %cst_19 = arith.constant dense<0.000000e+00> : vector<2x49xf32>
    %26 = vector.multi_reduction <add>, %25, %cst_19 [2] : vector<2x49x128xf32> to vector<2x49xf32>
    %27 = vector.shape_cast %26 : vector<2x49xf32> to vector<2x49x1xf32>
    %c0_20 = arith.constant 0 : index
    %28 = memref.load %arg10[%c0_20] : memref<1xf32, #tpu.memory_space<smem>>
    %29 = vector.broadcast %28 : f32 to vector<2x49x1xf32>
    %30 = arith.addf %27, %29 : vector<2x49x1xf32>
    %cst_21 = arith.constant dense<0xFF800000> : vector<2x1xf32>
    %31 = vector.multi_reduction <maximumf>, %30, %cst_21 [1] : vector<2x49x1xf32> to vector<2x1xf32>
    %32 = vector.shape_cast %31 : vector<2x1xf32> to vector<2x1x1xf32>
    %33 = vector.broadcast %32 : vector<2x1x1xf32> to vector<2x49x1xf32>
    %34 = arith.subf %30, %33 : vector<2x49x1xf32>
    %35 = math.exp %34 : vector<2x49x1xf32>
    %cst_22 = arith.constant dense<0.000000e+00> : vector<2x1xf32>
    %36 = vector.multi_reduction <add>, %35, %cst_22 [1] : vector<2x49x1xf32> to vector<2x1xf32>
    %37 = vector.shape_cast %36 : vector<2x1xf32> to vector<2x1x1xf32>
    %38 = tpu.reciprocal %37 {approx = true} : vector<2x1x1xf32> -> vector<2x1x1xf32>
    %39 = vector.broadcast %38 : vector<2x1x1xf32> to vector<2x49x1xf32>
    %40 = arith.mulf %35, %39 : vector<2x49x1xf32>
    %c0_23 = arith.constant 0 : index
    %c0_24 = arith.constant 0 : index
    %c0_25 = arith.constant 0 : index
    %41 = vector.load %arg2[%c0_23, %c0_24, %c0_25] : memref<2x49x256xf32, #tpu.memory_space<vmem>>, vector<2x49x256xf32>
    %42 = vector.broadcast %40 : vector<2x49x1xf32> to vector<2x49x256xf32>
    %43 = arith.mulf %42, %41 : vector<2x49x256xf32>
    %cst_26 = arith.constant dense<0.000000e+00> : vector<2x256xf32>
    %44 = vector.multi_reduction <add>, %43, %cst_26 [1] : vector<2x49x256xf32> to vector<2x256xf32>
    %c0_27 = arith.constant 0 : index
    %c0_28 = arith.constant 0 : index
    %45 = vector.load %arg11[%c0_27, %c0_28] : memref<2x256xf32, #tpu.memory_space<vmem>>, vector<2x256xf32>
    tpu.vector_store %arg11[%c0_27, %c0_28], %44 {strides = array<i32>} : memref<2x256xf32, #tpu.memory_space<vmem>>, vector<2x256xf32>,
    %cst_29 = arith.constant dense<0.000000e+00> : vector<2x256xf32>
    %46 = vector.multi_reduction <add>, %41, %cst_29 [1] : vector<2x49x256xf32> to vector<2x256xf32>
    %c0_30 = arith.constant 0 : index
    %c0_31 = arith.constant 0 : index
    %47 = vector.load %arg12[%c0_30, %c0_31] : memref<2x256xf32, #tpu.memory_space<vmem>>, vector<2x256xf32>
    tpu.vector_store %arg12[%c0_30, %c0_31], %46 {strides = array<i32>} : memref<2x256xf32, #tpu.memory_space<vmem>>, vector<2x256xf32>,
    return
  }
  func.func @transform_0(%arg0: i32) -> (i32, i32, i32) {
    %c0_i32 = arith.constant 0 : i32
    %c0_i32_0 = arith.constant 0 : i32
    %c0_i32_1 = arith.constant 0 : i32
    return %arg0, %c0_i32, %c0_i32_0 : i32, i32, i32
  }
  func.func @transform_1(%arg0: i32) -> (i32, i32, i32) {
    %c0_i32 = arith.constant 0 : i32
    %c0_i32_0 = arith.constant 0 : i32
    %c0_i32_1 = arith.constant 0 : i32
    return %arg0, %c0_i32, %c0_i32_0 : i32, i32, i32
  }
  func.func @transform_2(%arg0: i32) -> (i32, i32) {
    %c0_i32 = arith.constant 0 : i32
    %c0_i32_0 = arith.constant 0 : i32
    return %arg0, %c0_i32 : i32, i32
  }
  func.func @transform_3(%arg0: i32) -> (i32, i32) {
    %c0_i32 = arith.constant 0 : i32
    %c0_i32_0 = arith.constant 0 : i32
    return %arg0, %c0_i32 : i32, i32
  }
  func.func @transform_4(%arg0: i32) -> (i32, i32) {
    %c0_i32 = arith.constant 0 : i32
    %c0_i32_0 = arith.constant 0 : i32
    %c0_i32_1 = arith.constant 0 : i32
    return %c0_i32, %c0_i32_0 : i32, i32
  }
  func.func @transform_5(%arg0: i32) -> (i32, i32) {
    %c0_i32 = arith.constant 0 : i32
    %c0_i32_0 = arith.constant 0 : i32
    %c0_i32_1 = arith.constant 0 : i32
    return %c0_i32, %c0_i32_0 : i32, i32
  }
  func.func @transform_6(%arg0: i32) -> (i32, i32) {
    %c0_i32 = arith.constant 0 : i32
    %c0_i32_0 = arith.constant 0 : i32
    %c0_i32_1 = arith.constant 0 : i32
    return %c0_i32, %c0_i32_0 : i32, i32
  }
  func.func @transform_7(%arg0: i32) -> (i32, i32) {
    %c0_i32 = arith.constant 0 : i32
    %c0_i32_0 = arith.constant 0 : i32
    %c0_i32_1 = arith.constant 0 : i32
    return %c0_i32, %c0_i32_0 : i32, i32
  }
  func.func @transform_8(%arg0: i32) -> (i32, i32) {
    %c0_i32 = arith.constant 0 : i32
    %c0_i32_0 = arith.constant 0 : i32
    %c0_i32_1 = arith.constant 0 : i32
    return %c0_i32, %c0_i32_0 : i32, i32
  }
  func.func @transform_9(%arg0: i32) -> i32 {
    %c0_i32 = arith.constant 0 : i32
    %c0_i32_0 = arith.constant 0 : i32
    return %c0_i32 : i32
  }
  func.func @transform_10(%arg0: i32) -> (i32, i32) {
    %c0_i32 = arith.constant 0 : i32
    %c0_i32_0 = arith.constant 0 : i32
    return %arg0, %c0_i32 : i32, i32
  }
  func.func @transform_11(%arg0: i32) -> (i32, i32) {
    %c0_i32 = arith.constant 0 : i32
    %c0_i32_0 = arith.constant 0 : i32
    return %arg0, %c0_i32 : i32, i32
  }
}

module attributes {stable_mosaic.version = 11 : i64} {
  func.func @_linear_kernel(%arg0: i32, %arg1: i32, %arg2: memref<8x256xf32, #tpu.memory_space<vmem>>, %arg3: memref<256x128xbf16, #tpu.memory_space<vmem>>, %arg4: memref<1x128xf32, #tpu.memory_space<vmem>>, %arg5: memref<8x128xf32, #tpu.memory_space<vmem>>) attributes {dimension_semantics = [#tpu.dimension_semantics<parallel>, #tpu.dimension_semantics<parallel>], iteration_bounds = array<i64: 1, 1>, scalar_prefetch = 0 : i64, scratch_operands = 0 : i64, tpu.core_type = #tpu.core_type<tc>, window_params = [{transform_indices = @transform_0, window_bounds = array<i64: 8, 256>}, {transform_indices = @transform_1, window_bounds = array<i64: 256, 128>}, {transform_indices = @transform_2, window_bounds = array<i64: 1, 128>}, {transform_indices = @transform_3, window_bounds = array<i64: 8, 128>}]} {
    %c0 = arith.constant 0 : index
    %c0_0 = arith.constant 0 : index
    %0 = vector.load %arg2[%c0, %c0_0] : memref<8x256xf32, #tpu.memory_space<vmem>>, vector<8x256xf32>
    %1 = arith.truncf %0 : vector<8x256xf32> to vector<8x256xbf16>
    %c0_1 = arith.constant 0 : index
    %c0_2 = arith.constant 0 : index
    %2 = vector.load %arg3[%c0_1, %c0_2] : memref<256x128xbf16, #tpu.memory_space<vmem>>, vector<256x128xbf16>
    %cst = arith.constant dense<0.000000e+00> : vector<8x128xf32>
    %3 = tpu.matmul %1, %2, %cst {dimension_numbers = #tpu.dot_dimension_numbers<[1], [0], [0], [1], [0, 0, 1, 1], [], []>} : vector<8x256xbf16>, vector<256x128xbf16>, vector<8x128xf32> -> vector<8x128xf32>
    %c0_3 = arith.constant 0 : index
    %c0_4 = arith.constant 0 : index
    %4 = vector.load %arg4[%c0_3, %c0_4] : memref<1x128xf32, #tpu.memory_space<vmem>>, vector<1x128xf32>
    %5 = vector.broadcast %4 : vector<1x128xf32> to vector<8x128xf32>
    %6 = arith.addf %3, %5 : vector<8x128xf32>
    %c0_5 = arith.constant 0 : index
    %c0_6 = arith.constant 0 : index
    %7 = vector.load %arg5[%c0_5, %c0_6] : memref<8x128xf32, #tpu.memory_space<vmem>>, vector<8x128xf32>
    tpu.vector_store %arg5[%c0_5, %c0_6], %6 {strides = array<i32>} : memref<8x128xf32, #tpu.memory_space<vmem>>, vector<8x128xf32>,
    return
  }
  func.func @transform_0(%arg0: i32, %arg1: i32) -> (i32, i32) {
    %c0_i32 = arith.constant 0 : i32
    %c0_i32_0 = arith.constant 0 : i32
    return %arg0, %c0_i32 : i32, i32
  }
  func.func @transform_1(%arg0: i32, %arg1: i32) -> (i32, i32) {
    %c0_i32 = arith.constant 0 : i32
    %c0_i32_0 = arith.constant 0 : i32
    return %c0_i32, %arg1 : i32, i32
  }
  func.func @transform_2(%arg0: i32, %arg1: i32) -> (i32, i32) {
    %c0_i32 = arith.constant 0 : i32
    %c0_i32_0 = arith.constant 0 : i32
    return %c0_i32, %arg1 : i32, i32
  }
  func.func @transform_3(%arg0: i32, %arg1: i32) -> (i32, i32) {
    %c0_i32 = arith.constant 0 : i32
    return %arg0, %arg1 : i32, i32
  }
}

</mosaic_0001>

<bundles_post_ra>
// kernel: base_model_forward.10
= control target key start
LH: loop header
LB: loop body
LE: loop exit
PB: predicated region body
PF: predicated region fallthrough
CT: control target
= control target key end

     0   :  { %s637_s12 = smov 0   ;;  %s639_s13 = smov 0   ;;  %s725_s0 = inlined_call_operand.vmem [shape: f32[104,256], index: 0, kind: input, shape index: {}]   ;;  %s726_s1 = inlined_call_operand.vmem [shape: bf16[256,128], index: 1, kind: input, shape index: {}]   ;;  %s727_s2 = inlined_call_operand.vmem [shape: f32[1,128], index: 2, kind: input, shape index: {}]   ;;  %s728_s3 = inlined_call_operand.vmem [shape: f32[104,128], index: 3, kind: output, shape index: {}]  }
   0x1   :  { %s641_s14 = smov 0  }
   0x2 LB: > { %s25_s15 = sadd.s32 1, %s611_s13  ;;  %p507_p0 = scmp.ge.s32.totalorder %s615_s14, 1  ;;  %s615_s14 = sphi %s641_s14, %s13_s14   ;;  %s611_s13 = sphi %s639_s13, %s730_s13   ;;  %s607_s12 = sphi %s637_s12, %s729_s12  }
   0x3   : > { %p27_p1 = scmp.ge.s32.totalorder %s25_s15, 13  ;;  %p168_p2 = scmp.lt.s32.totalorder %s615_s14, 14 }
   0x5   : > { %s732_s15 = smov (%p27_p1, %s25_s15), 0  ;;  %p169_p3 = pnand %p507_p0, %p168_p2 }
   0x6   : > { %p201_p4 = scmp.lt.s32.totalorder (!%p169_p3), %s607_s12, 12 }
   0x7   : > { %172 = sbr.rel (%p169_p3) target bundleno = 247 (0xf7), region = 32 }
   0xc   : > { %v577_v0 = vld [vmem:[%s726_s1 + $0x78] sm:$0xff]   ;;  %v579_v2 = vld [vmem:[%s726_s1 + $0x70] sm:$0xff]   ;;  %v581_v4 = vld [vmem:[%s726_s1 + $0x68] sm:$0xff]   ;;  %s734_s12 = smov (!%p201_p4, %s607_s12), 12 }
   0xd   : > { %v578_v1 = vld [vmem:[%s726_s1 + $0x38] sm:$0xff]   ;;  %531 = vmatprep.subr.bf16.mxu0 %v577_v0  ;;  %v580_v3 = vld [vmem:[%s726_s1 + $0x30] sm:$0xff]   ;;  %v582_v5 = vld [vmem:[%s726_s1 + $0x28] sm:$0xff]   ;;  %s530_s30 = sshll.u32 %s734_s12, 4  ;;  %s510_s4 = sshll.u32 %s734_s12, 3 }
   0xe   : > { %532 = vmatpush3.bf16.msra.mxu0 %v578_v1  ;;  %v583_v6 = vld [vmem:[%s726_s1 + $0x60] sm:$0xff]   ;;  %v585_v8 = vld [vmem:[%s726_s1 + $0x58] sm:$0xff]   ;;  %s205_s10 = scalar_lea.vmem %s725_s0, %s530_s30  ;;  %v587_v10 = vld [vmem:[%s726_s1 + $0x50] sm:$0xff]   ;;  %s219_s7 = scalar_lea.vmem %s728_s3, %s510_s4 }
   0xf   : > { %533 = vmatprep.subr.bf16.mxu0 %v579_v2  ;;  %v584_v7 = vld [vmem:[%s726_s1 + $0x20] sm:$0xff]   ;;  %v586_v9 = vld [vmem:[%s726_s1 + $0x18] sm:$0xff]   ;;  %v222_v11 = vld [vmem:[%s205_s10 + $0x8] sm:$0xff] }
  0x10   : > { %v224_v12 = vpack.c.bf16 %v222_v11, %v222_v11  ;;  %v588_v13 = vld [vmem:[%s726_s1 + $0x10] sm:$0xff]   ;;  %v589_v14 = vld [vmem:[%s726_s1 + $0x48] sm:$0xff]   ;;  %v591_v16 = vld [vmem:[%s726_s1 + $0x40] sm:$0xff]  }
  0x11   : > { %v590_v15 = vld [vmem:[%s726_s1 + $0x8] sm:$0xff]   ;;  %v592_v17 = vld [vmem:[%s726_s1] sm:$0xff]  }
  0x12   : > { %534 = vmatpush3.bf16.msra.mxu0 %v580_v3  ;;  %392 = vmatprep.mubr.bf16.mxu0 %v224_v12  ;;  %v221_v18 = vld [vmem:[%s205_s10] sm:$0xff] }
  0x13   : > { %535 = vmatprep.subr.bf16.mxu0 %v581_v4  ;;  %v223_v19 = vpack.c.bf16 %v221_v18, %v221_v18  ;;  %v511_v21 = vld [vmem:[%s727_s2] ss:$0 sm:$0xff] }
  0x16   : > { %536 = vmatpush3.bf16.msra.mxu0 %v582_v5 }
  0x17   : > { %537 = vmatprep.subr.bf16.mxu0 %v583_v6 }
  0x1a   : > { %538 = vmatpush3.bf16.msra.mxu0 %v584_v7 }
  0x1b   : > { %539 = vmatprep.subr.bf16.mxu0 %v585_v8 }
  0x1e   : > { %540 = vmatpush3.bf16.msra.mxu0 %v586_v9 }
  0x1f   : > { %541 = vmatprep.subr.bf16.mxu0 %v587_v10 }
  0x22   : > { %542 = vmatpush3.bf16.msra.mxu0 %v588_v13 }
  0x23   : > { %543 = vmatprep.subr.bf16.mxu0 %v589_v14 }
  0x26   : > { %544 = vmatpush3.bf16.msra.mxu0 %v590_v15 }
  0x27   : > { %545 = vmatprep.subr.bf16.mxu0 %v591_v16 }
  0x2a   : > { %546 = vmatpush3.bf16.msra.mxu0 %v592_v17 }
  0x2d   : > { %393 = vmatmul.mubr.bf16.vlgmr.msra.gmra.mxu0 %v223_v19 }
  0xed   : > { %v547_v20 = vpop.f32.mrf.mxu0 }
  0xef   : > { %v548_v22 = vpop.f32.mrf.mxu0 }
  0xf0   : > { %v549_v23 = vadd.f32 %v548_v22, %v547_v20 }
  0xf1   : > { %v550_v24 = vpop.f32.mrf.mxu0 }
  0xf2   : > { %v395_v25 = vadd.f32 %v549_v23, %v511_v21 }
  0xf3   : > { %v551_v26 = vpop.f32.mrf.mxu0 }
  0xf4   : > { %v400_v27 = vmax.f32 %v395_v25, 0.0 }
  0xf6   : > { %401 = vst [vmem:[%s219_s7] sm:$0xff] %v400_v27 }
  0xf7 PF: > { %s13_s14 = sadd.s32 1, %s615_s14   ;;  %s729_s12 = smov %s611_s13 }
  0xf8   : > { %p10_p5 = scmp.ge.s32.totalorder %s13_s14, 15   ;;  %s730_s13 = smov %s732_s15 }
  0xfa   :  { %12 = sbr.rel (!%p10_p5) target bundleno = 2 (0x2), region = 68 }

// kernel: base_model_forward.8
= control target key start
LH: loop header
LB: loop body
LE: loop exit
PB: predicated region body
PF: predicated region fallthrough
CT: control target
= control target key end

     0   :  { %s662_s12 = smov 0   ;;  %s664_s13 = smov 0   ;;  %s745_s0 = inlined_call_operand.vmem [shape: f32[16,64], index: 0, kind: input, shape index: {}]   ;;  %s746_s1 = inlined_call_operand.vmem [shape: bf16[64,384], index: 1, kind: input, shape index: {}]   ;;  %s747_s2 = inlined_call_operand.vmem [shape: f32[1,384], index: 2, kind: input, shape index: {}]   ;;  %s748_s3 = inlined_call_operand.vmem [shape: f32[16,384], index: 3, kind: output, shape index: {}]  }
   0x1   :  { %s666_s14 = smov 0   ;;  %s668_s15 = smov 0  }
   0x2   :  { %s670_s16 = smov 0  }
   0x3 LB: > { %s22_s17 = sadd.s32 1, %s634_s15  ;;  %s517_s18 = sadd.s32 4294967295, %s638_s16   ;;  %s638_s16 = sphi %s670_s16, %s13_s16   ;;  %s634_s15 = sphi %s668_s15, %s753_s15   ;;  %s630_s14 = sphi %s666_s14, %s752_s14   ;;  %s626_s13 = sphi %s664_s13, %s751_s13   ;;  %s622_s12 = sphi %s662_s12, %s750_s12  }
   0x4   : > { %p23_p0 = scmp.ge.s32.totalorder %s22_s17, 3  ;;  %p65_p1 = scmp.ne.s32.totalorder %s626_s13, %s622_s12 }
   0x5   : > { %p66_p2 = scmp.eq.s32.totalorder %s638_s16, 0  ;;  %p123_p4 = scmp.eq.s32.totalorder %s517_s18, 2 }
   0x6   : > { %s755_s17 = smov (%p23_p0, %s22_s17), 0  ;;  %s58_s20 = sadd.s32 1, %s626_s13 }
   0x7   : > { %p67_p3 = por %p66_p2, %p65_p1  ;;  %s55_s19 = ssub.s32 %s634_s15, %s755_s17 }
   0x8   : > { %p56_p5 = scmp.eq.s32.totalorder %s55_s19, 0  ;;  %p697_p6 = por %p123_p4, %p65_p1 }
   0x9   : > { %p521_p7 = scmp.ge.s32.totalorder %s638_s16, 3 }
   0xa   : > { %s702_s22 = scalar_select %p56_p5, %s626_s13, %s58_s20  }
   0xb   : > { %154 = sbr.rel (%p521_p7) target bundleno = 25 (0x19), region = 20 }
  0x10   : > { %157 = sbr.rel (!%p67_p3) target bundleno = 25 (0x19), region = 24  ;;  %s159_s23 = sand.u32 (%p67_p3), 1, %s626_s13  }
  0x11   : > { %s523_s24 = sshll.u32 (%p67_p3), %s634_s15, 2  ;;  %s522_s25 = sshll.u32 (%p67_p3), %s159_s23, 5 }
  0x12   : > { %s163_s28 = scalar_lea.vmem (%p67_p3), %s746_s1, %s523_s24  ;;  %s161_s29 = scalar_lea.vmem (%p67_p3), [#allocation2], %s522_s25 }
  0x13   : > { %v180_v0 = vld [vmem:[%s163_s28] sm:$0xf] (%p67_p3)  ;;  %v182_v1 = vld [vmem:[%s163_s28 + $0xc] sm:$0xf] (%p67_p3)  ;;  %v184_v2 = vld [vmem:[%s163_s28 + $0x18] sm:$0xf] (%p67_p3) }
  0x14   : > { %181 = vst [vmem:[%s161_s29] sm:$0xf] (%p67_p3), %v180_v0  ;;  %183 = vst [vmem:[%s161_s29 + $0x4] sm:$0xf] (%p67_p3), %v182_v1  ;;  %v186_v3 = vld [vmem:[%s163_s28 + $0x24] sm:$0xf] (%p67_p3) }
  0x15   : > { %v188_v4 = vld [vmem:[%s163_s28 + $0x30] sm:$0xf]  ;;  %185 = vst [vmem:[%s161_s29 + $0x8] sm:$0xf] %v184_v2  ;;  %187 = vst [vmem:[%s161_s29 + $0xc] sm:$0xf] %v186_v3 }
  0x16   : > { %189 = vst [vmem:[%s161_s29 + $0x10] sm:$0xf] %v188_v4  ;;  %v190_v5 = vld [vmem:[%s163_s28 + $0x3c] sm:$0xf]  ;;  %v192_v6 = vld [vmem:[%s163_s28 + $0x48] sm:$0xf] }
  0x17   : > { %v194_v7 = vld [vmem:[%s163_s28 + $0x54] sm:$0xf]  ;;  %191 = vst [vmem:[%s161_s29 + $0x14] sm:$0xf] %v190_v5  ;;  %193 = vst [vmem:[%s161_s29 + $0x18] sm:$0xf] %v192_v6 }
  0x18   : > { %195 = vst [vmem:[%s161_s29 + $0x1c] sm:$0xf] %v194_v7 }
  0x19 PF: > { %p524_p8 = scmp.ge.s32.totalorder %s638_s16, 1  ;;  %p240_p9 = scmp.lt.s32.totalorder %s638_s16, 4 }
  0x1b   : > { %p241_p10 = pnand %p524_p8, %p240_p9 }
  0x1c   : > { %s247_s30 = sand.u32 (!%p241_p10), 1, %s622_s12   ;;  %p283_p11 = scmp.lt.s32.totalorder (!%p241_p10), %s630_s14, 2 }
  0x1d   : > { %244 = sbr.rel (%p241_p10) target bundleno = 259 (0x103), region = 69  ;;  %s525_s4 = sshll.u32 (!%p241_p10), %s247_s30, 5 }
  0x1e   : > { %s249_s5 = scalar_lea.vmem (!%p241_p10), [#allocation2], %s525_s4  ;;  %s526_s19 = sshll.u32 (!%p241_p10), %s247_s30, 4 }
  0x1f   : > { %s276_s20 = scalar_lea.vmem (!%p241_p10), [#allocation3], %s526_s19 }
  0x22   : > { %v640_v8 = vmov 0.0   ;;  %vm641_vm0 = vmmov 0   ;;  %v596_v9 = vld [vmem:[%s249_s5 + $0x18] sm:$0xff]   ;;  %v597_v10 = vld [vmem:[%s249_s5 + $0x10] sm:$0xff]   ;;  %v598_v11 = vld [vmem:[%s249_s5 + $0x8] sm:$0xff]   ;;  %vm330_vm1 = vcmask 523264  }
  0x23   : > { %542 = vmatprep.subr.bf16.mxu0 %v640_v8  ;;  %550 = vmatprep.mubr.msk.bf16.mxu0 %vm641_vm0, %v640_v8  ;;  %v599_v12 = vld [vmem:[%s249_s5] sm:$0xff]   ;;  %v289_v14 = vld [vmem:[%s745_s0 + $0x8] sm:$0xff]  ;;  %s284_s10 = scalar_select %p283_p11, %s630_s14, 2 }
  0x24   : > { %543 = vmatpush3.bf16.msra.mxu0 %v596_v9  ;;  %v288_v13 = vld [vmem:[%s745_s0] sm:$0xff]  ;;  %s534_s23 = sshll.u32 (%p697_p6), %s630_s14, 3 }
  0x25   : > { %544 = vmatprep.subr.bf16.mxu0 %v640_v8  ;;  %v290_v15 = vpack.c.bf16 %v289_v14, %v288_v13  ;;  %s285_s18 = scalar_lea.vmem %s747_s2, %s284_s10  ;;  %s388_s26 = scalar_lea.vmem (%p697_p6), %s748_s3, %s534_s23 }
  0x26   : > { %v527_v16 = vld [vmem:[%s285_s18] ss:$0 sm:$0xff] }
  0x28   : > { %545 = vmatpush3.bf16.msra.mxu0 %v597_v10 }
  0x29   : > { %546 = vmatprep.subr.bf16.mxu0 %v640_v8 }
  0x2c   : > { %547 = vmatpush3.bf16.msra.mxu0 %v598_v11 }
  0x2d   : > { %548 = vmatprep.subr.bf16.mxu0 %v640_v8 }
  0x30   : > { %549 = vmatpush3.bf16.msra.mxu0 %v599_v12 }
  0x33   : > { %551 = vmatmul.mubr.msk.bf16.vlgmr.msra.gmra.mxu0 %vm330_vm1, %v290_v15 }
  0xf3   : > { %v368_v17 = vpop.f32.mrf.mxu0 }
  0xf4   : > { %v369_v18 = vadd.f32 %v527_v16, %v368_v17 }
  0xf5   : > { %v552_v19 = vpop.f32.mrf.mxu0 }
  0xf6   : > { %375 = vst [vmem:[%s276_s20] sm:$0xff] %v369_v18  ;;  %383 = sbr.rel (!%p697_p6) target bundleno = 259 (0x103), region = 77 }
  0xf7   : > { %v371_v20 = vpop.f32.mrf.mxu0 }
  0xf8   : > { %v372_v21 = vadd.f32 %v527_v16, %v371_v20 }
  0xf9   : > { %v553_v22 = vpop.f32.mrf.mxu0 }
  0xfa   : > { %376 = vst [vmem:[%s276_s20 + $0x8] sm:$0xff] %v372_v21 }
  0xfd   : > { %v419_v23 = vld [vmem:[%s276_s20] sm:$0xff] }
  0xfe   : > { %420 = vst [vmem:[%s388_s26] sm:$0xff] %v419_v23 }
 0x101   : > { %v421_v24 = vld [vmem:[%s276_s20 + $0x8] sm:$0xff] }
 0x102   : > { %422 = vst [vmem:[%s388_s26 + $0x18] sm:$0xff] %v421_v24 }
 0x103 PF: > { %s13_s16 = sadd.s32 1, %s638_s16   ;;  %s750_s12 = smov %s626_s13 }
 0x104   : > { %p10_p12 = scmp.ge.s32.totalorder %s13_s16, 5   ;;  %s751_s13 = smov %s702_s22 }
 0x105   : > { %s752_s14 = smov %s634_s15  ;;  %s753_s15 = smov %s755_s17 }
 0x106   :  { %12 = sbr.rel (!%p10_p12) target bundleno = 3 (0x3), region = 152 }

// kernel: base_model_forward.9
= control target key start
LH: loop header
LB: loop body
LE: loop exit
PB: predicated region body
PF: predicated region fallthrough
CT: control target
= control target key end

     0   :  { %s844_s12 = smov 0   ;;  %s846_s13 = smov 0   ;;  %s947_s0 = inlined_call_operand.vmem [shape: f32[16,2,384], index: 0, kind: input, shape index: {}]   ;;  %s948_s1 = inlined_call_operand.vmem [shape: bf16[2,128,384], index: 1, kind: input, shape index: {}]   ;;  %s949_s2 = inlined_call_operand.vmem [shape: f32[2,1,384], index: 2, kind: input, shape index: {}]   ;;  %s950_s3 = inlined_call_operand.vmem [shape: f32[2,2,128], index: 3, kind: output, shape index: {}]  }
   0x1   :  { %s848_s14 = smov 0   ;;  %s850_s15 = smov 0  }
   0x2   :  { %s852_s16 = smov 0  }
   0x3 LB: > { %s22_s17 = sadd.s32 1, %s810_s14  ;;  %s25_s18 = sadd.s32 1, %s814_s15  ;;  %s818_s16 = sphi %s852_s16, %s13_s16   ;;  %s814_s15 = sphi %s850_s15, %s954_s15   ;;  %s810_s14 = sphi %s848_s14, %s953_s14   ;;  %s806_s13 = sphi %s846_s13, %s952_s13   ;;  %s802_s12 = sphi %s844_s12, %s951_s12  }
   0x4   : > { %p23_p0 = scmp.ge.s32.totalorder %s22_s17, 8  ;;  %p627_p1 = scmp.ge.s32.totalorder %s818_s16, 1 }
   0x5   : > { %p176_p2 = scmp.lt.s32.totalorder %s818_s16, 17 }
   0x6   : > { %s956_s17 = smov (%p23_p0, %s22_s17), 0  ;;  %s958_s18 = smov (!%p23_p0, %s25_s18), %s814_s15 }
   0x7   : > { %p177_p3 = pnand %p627_p1, %p176_p2  ;;  %p27_p4 = scmp.ge.s32.totalorder %s958_s18, 2 }
   0x8   : > { %s628_s19 = sshll.u32 (!%p177_p3), %s806_s13, 3  ;;  %p219_p5 = scmp.lt.s32.totalorder (!%p177_p3), %s806_s13, 1 }
   0x9   : > { %s960_s18 = smov (%p27_p4, %s958_s18), 0  ;;  %180 = sbr.rel (%p177_p3) target bundleno = 323 (0x143), region = 32 }
   0xa   : > { %s211_s20 = sadd.s32 (!%p177_p3), %s802_s12, %s628_s19  ;;  %p632_p7 = scmp.ne.s32.totalorder (!%p177_p3), %s802_s12, 0 }
   0xb   : > { %p212_p6 = scmp.lt.s32.totalorder (!%p177_p3), %s211_s20, 15 }
   0xe   : > { %s220_s21 = scalar_select %p219_p5, %s806_s13, 1 }
   0xf   : > { %s962_s20 = smov (!%p212_p6, %s211_s20), 15 }
  0x10   : > { %s692_s22 = smul.u32 192, %s220_s21  ;;  %s631_s23 = sshll.u32 %s220_s21, 1 }
  0x11   : > { %s691_s24 = smul.u32 6, %s962_s20  ;;  %s885_s27 = scalar_lea.vmem %s950_s3, %s631_s23 }
  0x12   : > { %s890_s30 = scalar_lea.vmem %s948_s1, %s692_s22  ;;  %s693_s4 = smul.u32 3, %s220_s21 }
  0x13   : > { %s895_s7 = scalar_lea.vmem %s947_s0, %s691_s24  ;;  %236 = sbr.rel (%p632_p7) target bundleno = 26 (0x1a), region = 36 }
  0x14   : > { %s900_s10 = scalar_lea.vmem %s949_s2, %s693_s4 }
  0x18   : > { %v820_v0 = vmov 0.0  }
  0x19   : > { %237 = vst [vmem:[#allocation2] sm:$0x3] %v820_v0 }
  0x1a PF: > { %p238_p8 = scmp.eq.s32.totalorder %s806_s13, 0 }
  0x1c   : > { %s239_s11 = scalar_select %p238_p8, 8, 6 }
  0x1e   : > { %p633_p9 = scmp.ge.s32.totalorder %s802_s12, %s239_s11 }
  0x20   : > { %243 = sbr.rel (%p633_p9) target bundleno = 323 (0x143), region = 40 }
  0x25   : > { %v738_v1 = vld [vmem:[%s890_s30 + $0xac] ss:$12 sps:$4 sm:$0xff]   ;;  %v740_v2 = vld [vmem:[%s890_s30 + $0xa8] ss:$12 sps:$4 sm:$0xff]   ;;  %v821_v3 = vmov 0.0   ;;  %v822_v4 = vmov 0   ;;  %v281_v29 = vlaneseq }
  0x26   : > { %671 = vmatprep.subr.bf16.mxu1 %v821_v3  ;;  %456 = vmatprep.mubr.bf16.mxu0 %v822_v4  ;;  %v741_v5 = vld [vmem:[%s890_s30 + $0x94] ss:$12 sps:$4 sm:$0xff]   ;;  %vm823_vm0 = vmmov 0   ;;  %v743_v6 = vld [vmem:[%s890_s30 + $0x90] ss:$12 sps:$4 sm:$0xff]  }
  0x27   : > { %424 = vmatprep.subr.bf16.mxu0 %v738_v1  ;;  %687 = vmatprep.mubr.msk.bf16.mxu1 %vm823_vm0, %v821_v3  ;;  %v744_v7 = vld [vmem:[%s890_s30 + $0x7c] ss:$12 sps:$4 sm:$0xff]   ;;  %v746_v8 = vld [vmem:[%s890_s30 + $0x78] ss:$12 sps:$4 sm:$0xff]   ;;  %v749_v10 = vld [vmem:[%s890_s30 + $0x60] ss:$12 sps:$4 sm:$0xff]  }
  0x28   : > { %425 = vmatpush1.bf16.msra.mxu0 %v740_v2  ;;  %v747_v9 = vld [vmem:[%s890_s30 + $0x64] ss:$12 sps:$4 sm:$0xff]   ;;  %v750_v12 = vld [vmem:[%s890_s30 + $0x4c] ss:$12 sps:$4 sm:$0xff]   ;;  %v752_v14 = vld [vmem:[%s890_s30 + $0x48] ss:$12 sps:$4 sm:$0xff]  }
  0x29   : > { %426 = vmatprep.subr.bf16.mxu0 %v741_v5  ;;  %v762_v11 = vld [vmem:[%s890_s30 + $0xb0] ss:$12 sps:$4 sm:$0xff]   ;;  %v763_v13 = vld [vmem:[%s890_s30 + $0x98] ss:$12 sps:$4 sm:$0xff]   ;;  %v753_v15 = vld [vmem:[%s890_s30 + $0x34] ss:$12 sps:$4 sm:$0xff]  }
  0x2a   : > { %672 = vmatpush3.bf16.msra.mxu1 %v762_v11  ;;  %v764_v16 = vld [vmem:[%s890_s30 + $0x80] ss:$12 sps:$4 sm:$0xff]   ;;  %v755_v17 = vld [vmem:[%s890_s30 + $0x30] ss:$12 sps:$4 sm:$0xff]   ;;  %v765_v19 = vld [vmem:[%s890_s30 + $0x68] ss:$12 sps:$4 sm:$0xff]  }
  0x2b   : > { %673 = vmatprep.subr.bf16.mxu1 %v821_v3  ;;  %v756_v18 = vld [vmem:[%s890_s30 + $0x1c] ss:$12 sps:$4 sm:$0xff]   ;;  %v758_v20 = vld [vmem:[%s890_s30 + $0x18] ss:$12 sps:$4 sm:$0xff]   ;;  %v761_v23 = vld [vmem:[%s890_s30] ss:$12 sps:$4 sm:$0xff]  }
  0x2c   : > { %427 = vmatpush1.bf16.msra.mxu0 %v743_v6  ;;  %v759_v21 = vld [vmem:[%s890_s30 + $0x4] ss:$12 sps:$4 sm:$0xff]   ;;  %v244_v24 = vld [vmem:[#allocation2] sm:$0x3]  ;;  %v769_v28 = vld [vmem:[%s890_s30 + $0x8] ss:$12 sps:$4 sm:$0xff]  }
  0x2d   : > { %428 = vmatprep.subr.bf16.mxu0 %v744_v7  ;;  %v766_v22 = vld [vmem:[%s890_s30 + $0x50] ss:$12 sps:$4 sm:$0xff]   ;;  %v767_v25 = vld [vmem:[%s890_s30 + $0x38] ss:$12 sps:$4 sm:$0xff]   ;;  %v246_v26 = vpack.c.bf16 %v244_v24, %v244_v24  ;;  %v768_v27 = vld [vmem:[%s890_s30 + $0x20] ss:$12 sps:$4 sm:$0xff]  }
  0x2e   : > { %674 = vmatpush3.bf16.msra.mxu1 %v763_v13  ;;  %v282_v30 = vshrl.u32 %v281_v29, 7  ;;  %v279_v32 = vld [vmem:[%s900_s10] sm:$0x7] }
  0x2f   : > { %675 = vmatprep.subr.bf16.mxu1 %v821_v3  ;;  %v245_v35 = vld [vmem:[%s895_s7] sm:$0x3f] }
  0x30   : > { %429 = vmatpush1.bf16.msra.mxu0 %v746_v8  ;;  %v283_v31 = vsub.s32 0, %v282_v30  ;;  %v287_v34 = vsub.s32 1, %v282_v30  ;;  %v513_v44 = vrot.slane %v245_v35, 2  ;;  %v291_v54 = vsub.s32 2, %v282_v30 }
  0x31   : > { %430 = vmatprep.subr.bf16.mxu0 %v747_v9  ;;  %v523_v59 = vrot.slane %v245_v35, 4 }
  0x32   : > { %676 = vmatpush3.bf16.msra.mxu1 %v764_v16  ;;  %v284_v33 = vrot.slane %v279_v32, %v283_v31  ;;  %v288_v38 = vrot.slane %v279_v32, %v287_v34  ;;  %v292_v55 = vrot.slane %v279_v32, %v291_v54 }
  0x33   : > { %677 = vmatprep.subr.bf16.mxu1 %v821_v3 }
  0x34   : > { %431 = vmatpush1.bf16.msra.mxu0 %v749_v10 }
  0x35   : > { %432 = vmatprep.subr.bf16.mxu0 %v750_v12 }
  0x36   : > { %678 = vmatpush3.bf16.msra.mxu1 %v765_v19 }
  0x37   : > { %679 = vmatprep.subr.bf16.mxu1 %v821_v3 }
  0x38   : > { %433 = vmatpush1.bf16.msra.mxu0 %v752_v14 }
  0x39   : > { %434 = vmatprep.subr.bf16.mxu0 %v753_v15 }
  0x3a   : > { %680 = vmatpush3.bf16.msra.mxu1 %v766_v22 }
  0x3b   : > { %681 = vmatprep.subr.bf16.mxu1 %v821_v3 }
  0x3c   : > { %435 = vmatpush1.bf16.msra.mxu0 %v755_v17 }
  0x3d   : > { %436 = vmatprep.subr.bf16.mxu0 %v756_v18 }
  0x3e   : > { %682 = vmatpush3.bf16.msra.mxu1 %v767_v25 }
  0x3f   : > { %683 = vmatprep.subr.bf16.mxu1 %v821_v3 }
  0x40   : > { %437 = vmatpush1.bf16.msra.mxu0 %v758_v20 }
  0x41   : > { %438 = vmatprep.subr.bf16.mxu0 %v759_v21 }
  0x42   : > { %684 = vmatpush3.bf16.msra.mxu1 %v768_v27 }
  0x43   : > { %685 = vmatprep.subr.bf16.mxu1 %v821_v3 }
  0x44   : > { %439 = vmatpush1.bf16.msra.mxu0 %v761_v23 }
  0x46   : > { %686 = vmatpush3.bf16.msra.mxu1 %v769_v28 }
  0x47   : > { %457 = vmatmul.mubr.bf16.vlgmr.msra.gmra.mxu0 %v246_v26 }
  0x49   : > { %688 = vmatmul.mubr.bf16.vlgmr.msra.gmra.mxu1 %v246_v26 }
 0x107   : > { %v458_v36 = vpop.f32.mrf.mxu0 }
 0x108   : > { %v459_v37 = vadd.f32 %v458_v36, %v284_v33 }
 0x109   : > { %v460_v39 = vpop.f32.mrf.mxu0  ;;  %v499_v47 = vpop.f32.mrf.mxu1 }
 0x10a   : > { %v505_v40 = vadd.f32 %v459_v37, %v245_v35  ;;  %v461_v43 = vadd.f32 %v460_v39, %v288_v38  ;;  %v500_v58 = vadd.f32 %v499_v47, %v292_v55 }
 0x10b   : > { %v462_v41 = vpop.f32.mrf.mxu0  ;;  %v689_v48 = vpop.f32.mrf.mxu1 }
 0x10c   : > { %v658_v42 = vmul.f32 -1.442695, %v505_v40  ;;  %v515_v46 = vadd.f32 %v513_v44, %v461_v43 }
 0x10d   : > { %v463_v45 = vpop.f32.mrf.mxu0  ;;  %v502_v50 = vpop.f32.mrf.mxu1 }
 0x10e   : > { %770 = vpow2.f32 %v658_v42  ;;  %v659_v49 = vmul.f32 -1.442695, %v515_v46 }
 0x10f   : > { %v690_v51 = vpop.f32.mrf.mxu1 }
 0x110   : > { %772 = vpow2.f32 %v659_v49 }
 0x11b   : > { %v771_v52 = vpop.eup %770 }
 0x11c   : > { %v509_v53 = vadd.f32 1.0, %v771_v52 }
 0x11d   : > { %v773_v56 = vpop.eup %772 }
 0x11e   : > { %774 = vrcp.f32 %v509_v53  ;;  %v519_v57 = vadd.f32 1.0, %v773_v56 }
 0x120   : > { %776 = vrcp.f32 %v519_v57 }
 0x12b   : > { %v775_v60 = vpop.eup %774 }
 0x12c   : > { %v522_v61 = vmul.f32 %v775_v60, %v500_v58 }
 0x12d   : > { %v777_v63 = vpop.eup %776 }
 0x12e   : > { %v525_v62 = vadd.f32 %v523_v59, %v522_v61  ;;  %v527_v0 = vsub.f32 1.0, %v777_v63  ;;  %v529_v2 = vmul.f32 %v777_v63, %v244_v24 }
 0x130   : > { %778 = vtanh.f32 %v525_v62 }
 0x13d   : > { %v779_v1 = vpop.eup %778 }
 0x13e   : > { %v528_v3 = vmul.f32 %v779_v1, %v527_v0 }
 0x140   : > { %v530_v4 = vadd.f32 %v529_v2, %v528_v3 }
 0x142   : > { %531 = vst [vmem:[#allocation2] sm:$0x3] %v530_v4  ;;  %532 = vst [vmem:[%s885_s27] sm:$0x3] %v530_v4 }
 0x143 PF: > { %s13_s16 = sadd.s32 1, %s818_s16   ;;  %s951_s12 = smov %s810_s14 }
 0x144   : > { %p10_p10 = scmp.ge.s32.totalorder %s13_s16, 18   ;;  %s952_s13 = smov %s814_s15 }
 0x145   : > { %s953_s14 = smov %s956_s17  ;;  %s954_s15 = smov %s960_s18 }
 0x146   :  { %12 = sbr.rel (!%p10_p10) target bundleno = 3 (0x3), region = 76 }

// kernel: base_model_forward.13
= control target key start
LH: loop header
LB: loop body
LE: loop exit
PB: predicated region body
PF: predicated region fallthrough
CT: control target
= control target key end

     0   :  { %s334_s1 = inlined_call_operand.vmem [shape: bf16[256,128], index: 1, kind: input, shape index: {}]   ;;  %s335_s0 = inlined_call_operand.vmem [shape: f32[8,256], index: 0, kind: input, shape index: {}]   ;;  %s336_s2 = inlined_call_operand.vmem [shape: f32[1,128], index: 2, kind: input, shape index: {}]   ;;  %s337_s3 = inlined_call_operand.vmem [shape: f32[8,128], index: 3, kind: output, shape index: {}]  }
   0x1   :  { %v238_v0 = vld [vmem:[%s334_s1 + $0x78] sm:$0xff]   ;;  %v240_v2 = vld [vmem:[%s334_s1 + $0x70] sm:$0xff]   ;;  %v242_v4 = vld [vmem:[%s334_s1 + $0x68] sm:$0xff]  }
   0x2   :  { %v239_v1 = vld [vmem:[%s334_s1 + $0x38] sm:$0xff]   ;;  %216 = vmatprep.subr.bf16.mxu0 %v238_v0  ;;  %v241_v3 = vld [vmem:[%s334_s1 + $0x30] sm:$0xff]   ;;  %v243_v5 = vld [vmem:[%s334_s1 + $0x28] sm:$0xff]  }
   0x3   :  { %217 = vmatpush3.bf16.msra.mxu0 %v239_v1  ;;  %v244_v6 = vld [vmem:[%s334_s1 + $0x60] sm:$0xff]   ;;  %v246_v8 = vld [vmem:[%s334_s1 + $0x58] sm:$0xff]   ;;  %v248_v10 = vld [vmem:[%s334_s1 + $0x50] sm:$0xff]  }
   0x4   :  { %218 = vmatprep.subr.bf16.mxu0 %v240_v2  ;;  %v245_v7 = vld [vmem:[%s334_s1 + $0x20] sm:$0xff]   ;;  %v247_v9 = vld [vmem:[%s334_s1 + $0x18] sm:$0xff]   ;;  %v16_v11 = vld [vmem:[%s335_s0 + $0x8] sm:$0xff] }
   0x5   :  { %v18_v12 = vpack.c.bf16 %v16_v11, %v16_v11  ;;  %v249_v13 = vld [vmem:[%s334_s1 + $0x10] sm:$0xff]   ;;  %v250_v14 = vld [vmem:[%s334_s1 + $0x48] sm:$0xff]   ;;  %v252_v16 = vld [vmem:[%s334_s1 + $0x40] sm:$0xff]  }
   0x6   :  { %v251_v15 = vld [vmem:[%s334_s1 + $0x8] sm:$0xff]   ;;  %v253_v17 = vld [vmem:[%s334_s1] sm:$0xff]  }
   0x7   :  { %219 = vmatpush3.bf16.msra.mxu0 %v241_v3  ;;  %186 = vmatprep.mubr.bf16.mxu0 %v18_v12  ;;  %v15_v18 = vld [vmem:[%s335_s0] sm:$0xff] }
   0x8   :  { %220 = vmatprep.subr.bf16.mxu0 %v242_v4  ;;  %v17_v19 = vpack.c.bf16 %v15_v18, %v15_v18  ;;  %v199_v21 = vld [vmem:[%s336_s2] ss:$0 sm:$0xff] }
   0xb   :  { %221 = vmatpush3.bf16.msra.mxu0 %v243_v5 }
   0xc   :  { %222 = vmatprep.subr.bf16.mxu0 %v244_v6 }
   0xf   :  { %223 = vmatpush3.bf16.msra.mxu0 %v245_v7 }
  0x10   :  { %224 = vmatprep.subr.bf16.mxu0 %v246_v8 }
  0x13   :  { %225 = vmatpush3.bf16.msra.mxu0 %v247_v9 }
  0x14   :  { %226 = vmatprep.subr.bf16.mxu0 %v248_v10 }
  0x17   :  { %227 = vmatpush3.bf16.msra.mxu0 %v249_v13 }
  0x18   :  { %228 = vmatprep.subr.bf16.mxu0 %v250_v14 }
  0x1b   :  { %229 = vmatpush3.bf16.msra.mxu0 %v251_v15 }
  0x1c   :  { %230 = vmatprep.subr.bf16.mxu0 %v252_v16 }
  0x1f   :  { %231 = vmatpush3.bf16.msra.mxu0 %v253_v17 }
  0x22   :  { %187 = vmatmul.mubr.bf16.vlgmr.msra.gmra.mxu0 %v17_v19 }
  0xe2   :  { %v232_v20 = vpop.f32.mrf.mxu0 }
  0xe4   :  { %v233_v22 = vpop.f32.mrf.mxu0 }
  0xe5   :  { %v234_v23 = vadd.f32 %v233_v22, %v232_v20 }
  0xe6   :  { %v235_v24 = vpop.f32.mrf.mxu0 }
  0xe7   :  { %v189_v25 = vadd.f32 %v234_v23, %v199_v21 }
  0xe8   :  { %v236_v26 = vpop.f32.mrf.mxu0 }
  0xe9   :  { %194 = vst [vmem:[%s337_s3] sm:$0xff] %v189_v25 }

// kernel: base_model_forward.11
= control target key start
LH: loop header
LB: loop body
LE: loop exit
PB: predicated region body
PF: predicated region fallthrough
CT: control target
= control target key end

     0   :  { %v855_v0 = vmov 0.0   ;;  %vm856_vm0 = vmmov 0   ;;  %v857_v22 = vmov 1966171168   ;;  %v294_v24 = vlaneseq  ;;  %s1282_s4 = inlined_call_operand.vmem [shape: bf16[128,128], index: 4, kind: input, shape index: {}]   ;;  %s1283_s6 = inlined_call_operand.vmem [shape: bf16[128,128], index: 6, kind: input, shape index: {}]   ;;  %s1284_s2 = inlined_call_operand.vmem [shape: f32[2,128], index: 2, kind: input, shape index: {}]   ;;  %s1285_s3 = inlined_call_operand.vmem [shape: f32[2,128], index: 3, kind: input, shape index: {}]   ;;  %s1286_s5 = inlined_call_operand.vmem [shape: f32[1,128], index: 5, kind: input, shape index: {}]   ;;  %s1287_s7 = inlined_call_operand.vmem [shape: f32[1,128], index: 7, kind: input, shape index: {}]   ;;  %s1288_s8 = inlined_call_operand.vmem [shape: f32[1,128], index: 8, kind: input, shape index: {}]   ;;  %s1289_s0 = inlined_call_operand.vmem [shape: f32[2,49,128], index: 0, kind: input, shape index: {}]   ;;  %s1290_s1 = inlined_call_operand.vmem [shape: f32[2,49,256], index: 1, kind: input, shape index: {}]   ;;  %s1291_s11 = inlined_call_operand.vmem [shape: f32[2,256], index: 11, kind: output, shape index: {1}]   ;;  %s1292_s9 = inlined_call_operand.<no memory space> [shape: f32[1], index: 9, kind: input, shape index: {}]   ;;  %s1293_s10 = inlined_call_operand.vmem [shape: f32[2,256], index: 10, kind: output, shape index: {0}]  }
   0x1   :  { %763 = vmatprep.subr.bf16.mxu0 %v855_v0  ;;  %783 = vmatprep.subr.bf16.mxu1 %v855_v0  ;;  %v807_v1 = vld [vmem:[%s1282_s4 + $0x38] sm:$0xff]   ;;  %v809_v3 = vld [vmem:[%s1282_s4 + $0x30] sm:$0xff]   ;;  %v811_v5 = vld [vmem:[%s1282_s4 + $0x28] sm:$0xff]   ;;  %v292_v23 = vunpack.c.l.s4 %v857_v22  ;;  %vm349_vm1 = vcmask 1040384   ;;  %vm627_vm2 = vcmask 1041409   ;;  %vm629_vm3 = vcmask 1043459  }
   0x2   :  { %v808_v2 = vld [vmem:[%s1283_s6 + $0x38] sm:$0xff]   ;;  %779 = vmatprep.mubr.msk.bf16.mxu0 %vm856_vm0, %v855_v0  ;;  %799 = vmatprep.mubr.msk.bf16.mxu1 %vm856_vm0, %v855_v0  ;;  %v810_v4 = vld [vmem:[%s1283_s6 + $0x30] sm:$0xff]   ;;  %v812_v6 = vld [vmem:[%s1283_s6 + $0x28] sm:$0xff]   ;;  %v979_v31 = vshrl.u32 %v294_v24, 7  ;;  %vm631_vm4 = vcmask 1045509   ;;  %vm633_vm5 = vcmask 1047559  }
   0x3   :  { %764 = vmatpush3.bf16.msra.mxu0 %v807_v1  ;;  %784 = vmatpush3.bf16.msra.mxu1 %v808_v2  ;;  %v813_v7 = vld [vmem:[%s1282_s4 + $0x20] sm:$0xff]   ;;  %v815_v9 = vld [vmem:[%s1282_s4 + $0x18] sm:$0xff]   ;;  %v817_v11 = vld [vmem:[%s1282_s4 + $0x10] sm:$0xff]   ;;  %v293_v30 = vunpack.c.0.s8 %v292_v23 }
   0x4   :  { %765 = vmatprep.subr.bf16.mxu0 %v855_v0  ;;  %785 = vmatprep.subr.bf16.mxu1 %v855_v0  ;;  %v814_v8 = vld [vmem:[%s1283_s6 + $0x20] sm:$0xff]   ;;  %v816_v10 = vld [vmem:[%s1283_s6 + $0x18] sm:$0xff]   ;;  %v818_v12 = vld [vmem:[%s1283_s6 + $0x10] sm:$0xff]   ;;  %v315_v45 = vsub.s32 0, %v979_v31 }
   0x5   :  { %v819_v13 = vld [vmem:[%s1282_s4 + $0x8] sm:$0xff]   ;;  %v821_v15 = vld [vmem:[%s1282_s4] sm:$0xff]   ;;  %v296_v40 = vsub.s32 %v293_v30, %v979_v31  ;;  %v278_v55 = vld [vmem:[%s1289_s0 + $0x10] sm:$0xff] }
   0x6   :  { %v820_v14 = vld [vmem:[%s1283_s6 + $0x8] sm:$0xff]   ;;  %v39_v16 = vld [vmem:[%s1284_s2] sm:$0x3]  ;;  %v283_v59 = vld [vmem:[%s1289_s0 + $0x38] sm:$0xff] }
   0x7   :  { %766 = vmatpush3.bf16.msra.mxu0 %v809_v3  ;;  %786 = vmatpush3.bf16.msra.mxu1 %v810_v4  ;;  %v822_v17 = vld [vmem:[%s1283_s6] sm:$0xff]   ;;  %v40_v19 = vpack.c.bf16 %v39_v16, %v39_v16  ;;  %v277_v48 = vld [vmem:[%s1289_s0 + $0x8] sm:$0xff]  ;;  %v279_v60 = vld [vmem:[%s1289_s0 + $0x18] sm:$0xff] }
   0x8   :  { %767 = vmatprep.subr.bf16.mxu0 %v855_v0  ;;  %787 = vmatprep.subr.bf16.mxu1 %v855_v0  ;;  %v153_v18 = vld [vmem:[%s1285_s3] sm:$0x3]  ;;  %v285_v63 = vld [vmem:[%s1289_s0 + $0x48] sm:$0xff]  ;;  %v1057_v23 = vld [vmem:[%s1290_s1 + $0x90] sm:$0xff] }
   0x9   :  { %v154_v20 = vpack.c.bf16 %v153_v18, %v153_v18  ;;  %v726_v21 = vld [vmem:[%s1286_s5] ss:$0 sm:$0xff]  ;;  %v1038_v18 = vld [vmem:[%s1290_s1 + $0x78] sm:$0xff] }
   0xa   :  { %v735_v25 = vld [vmem:[%s1287_s7] ss:$0 sm:$0xff]  ;;  %v1062_v24 = vld [vmem:[%s1290_s1 + $0x98] sm:$0xff] }
   0xb   :  { %768 = vmatpush3.bf16.msra.mxu0 %v811_v5  ;;  %788 = vmatpush3.bf16.msra.mxu1 %v812_v6  ;;  %v744_v37 = vld [vmem:[%s1288_s8] ss:$0 sm:$0xff]  ;;  %v289_v5 = vld [vmem:[%s1289_s0 + $0x68] sm:$0x1] }
   0xc   :  { %769 = vmatprep.subr.bf16.mxu0 %v855_v0  ;;  %789 = vmatprep.subr.bf16.mxu1 %v855_v0  ;;  %v276_v49 = vld [vmem:[%s1289_s0] sm:$0xff] }
   0xd   :  { %v280_v54 = vld [vmem:[%s1289_s0 + $0x20] sm:$0xff] }
   0xe   :  { %v284_v3 = vld [vmem:[%s1289_s0 + $0x40] sm:$0xff] }
   0xf   :  { %770 = vmatpush3.bf16.msra.mxu0 %v813_v7  ;;  %790 = vmatpush3.bf16.msra.mxu1 %v814_v8  ;;  %v288_v4 = vld [vmem:[%s1289_s0 + $0x60] sm:$0xff]  ;;  %v287_v8 = vld [vmem:[%s1289_s0 + $0x58] sm:$0xff] }
  0x10   :  { %771 = vmatprep.subr.bf16.mxu0 %v855_v0  ;;  %791 = vmatprep.subr.bf16.mxu1 %v855_v0 }
  0x13   :  { %772 = vmatpush3.bf16.msra.mxu0 %v815_v9  ;;  %792 = vmatpush3.bf16.msra.mxu1 %v816_v10  ;;  %v282_v10 = vld [vmem:[%s1289_s0 + $0x30] sm:$0x1] }
  0x14   :  { %773 = vmatprep.subr.bf16.mxu0 %v855_v0  ;;  %793 = vmatprep.subr.bf16.mxu1 %v855_v0 }
  0x17   :  { %774 = vmatpush3.bf16.msra.mxu0 %v817_v11  ;;  %794 = vmatpush3.bf16.msra.mxu1 %v818_v12 }
  0x18   :  { %775 = vmatprep.subr.bf16.mxu0 %v855_v0  ;;  %795 = vmatprep.subr.bf16.mxu1 %v855_v0 }
  0x1b   :  { %776 = vmatpush3.bf16.msra.mxu0 %v819_v13  ;;  %796 = vmatpush3.bf16.msra.mxu1 %v820_v14  ;;  %v281_v14 = vld [vmem:[%s1289_s0 + $0x28] sm:$0xff] }
  0x1c   :  { %777 = vmatprep.subr.bf16.mxu0 %v855_v0  ;;  %797 = vmatprep.subr.bf16.mxu1 %v855_v0  ;;  %v286_v0 = vld [vmem:[%s1289_s0 + $0x50] sm:$0xff] }
  0x1f   :  { %778 = vmatpush3.bf16.msra.mxu0 %v821_v15  ;;  %798 = vmatpush3.bf16.msra.mxu1 %v822_v17  ;;  %v1033_v17 = vld [vmem:[%s1290_s1 + $0x70] sm:$0xff] }
  0x22   :  { %780 = vmatmul.mubr.bf16.vlgmr.msra.gmra.mxu0 %v40_v19  ;;  %800 = vmatmul.mubr.bf16.vlgmr.msra.gmra.mxu1 %v154_v20  ;;  %v1043_v19 = vld [vmem:[%s1290_s1 + $0x80] sm:$0xff]  ;;  %v1048_v20 = vld [vmem:[%s1290_s1 + $0x88] sm:$0xff] }
  0x23   :  { %v676_v22 = vadd.f32 %v1048_v20, %v1038_v18 }
  0xe2   :  { %v146_v26 = vpop.f32.mrf.mxu0  ;;  %v260_v28 = vpop.f32.mrf.mxu1 }
  0xe3   :  { %v147_v27 = vadd.f32 %v726_v21, %v146_v26  ;;  %v261_v29 = vadd.f32 %v735_v25, %v260_v28  ;;  %v663_v21 = vadd.f32 %v1043_v19, %v1033_v17  ;;  %v677_v26 = vadd.f32 %v676_v22, %v1062_v24  ;;  %v1074_v28 = vld [vmem:[%s1290_s1 + $0xa8] sm:$0xff] }
  0xe4   :  { %v781_v32 = vpop.f32.mrf.mxu0  ;;  %v801_v34 = vpop.f32.mrf.mxu1 }
  0xe5   :  { %v152_v33 = vmax.f32 %v147_v27, 0.0  ;;  %v266_v35 = vmax.f32 %v261_v29, 0.0  ;;  %v664_v25 = vadd.f32 %v663_v21, %v1057_v23  ;;  %v1069_v27 = vld [vmem:[%s1290_s1 + $0xa0] sm:$0xff]  ;;  %v678_v30 = vadd.f32 %v677_v26, %v1074_v28  ;;  %v1081_v32 = vld [vmem:[%s1290_s1 + $0xb0] sm:$0xff] }
  0xe6   :  { %v149_v36 = vpop.f32.mrf.mxu0  ;;  %v263_v38 = vpop.f32.mrf.mxu1 }
  0xe7   :  { %v267_v39 = vmul.f32 %v266_v35, %v152_v33  ;;  %v665_v29 = vadd.f32 %v664_v25, %v1069_v27  ;;  %v1086_v33 = vld [vmem:[%s1290_s1 + $0xb8] sm:$0xff]  ;;  %v1093_v36 = vld [vmem:[%s1290_s1 + $0xc0] sm:$0xff]  ;;  %v1103_v38 = vld [vmem:[%s1290_s1 + $0xd0] sm:$0x1] }
  0xe8   :  { %v782_v41 = vpop.f32.mrf.mxu0  ;;  %v802_v42 = vpop.f32.mrf.mxu1  ;;  %v679_v35 = vadd.f32 %v678_v30, %v1086_v33 }
  0xe9   :  { %v275_v43 = vmul.f32 %v744_v37, %v267_v39  ;;  %v666_v34 = vadd.f32 %v665_v29, %v1081_v32  ;;  %v1098_v37 = vld [vmem:[%s1290_s1 + $0xc8] sm:$0xff]  ;;  %v1108_v39 = vld [vmem:[%s1290_s1 + $0xd8] sm:$0x1]  ;;  %v668_v42 = vsel %vm349_vm1, %v1103_v38, 0.0 }
  0xea   :  { %v680_v41 = vadd.f32 %v679_v35, %v1098_v37 }
  0xeb   :  { %v297_v44 = vrot.slane %v275_v43, %v296_v40  ;;  %v681_v43 = vsel %vm349_vm1, %v1108_v39, 0.0 }
  0xed   :  { %v298_v46 = vcombine.high %v297_v44, %v297_v44  ;;  %v305_v47 = vrot.slane %v297_v44, %v296_v40 }
  0xef   :  { %v316_v50 = vrot.slane %v305_v47, %v315_v45  ;;  %v312_v51 = vrot.slane %v298_v46, %v296_v40  ;;  %v667_v40 = vadd.f32 %v666_v34, %v1093_v36 }
  0xf1   :  { %v324_v52 = vmul.f32 %v316_v50, %v277_v48  ;;  %v323_v53 = vmul.f32 %v316_v50, %v276_v49  ;;  %v320_v56 = vrot.slane %v312_v51, %v315_v45  ;;  %v327_v57 = vmul.f32 %v316_v50, %v280_v54  ;;  %v1124_v51 = vld [vmem:[%s1290_s1 + $0x8] sm:$0xff] }
  0xf2   :  { %v325_v58 = vmul.f32 %v316_v50, %v278_v55  ;;  %v326_v62 = vmul.f32 %v316_v50, %v279_v60  ;;  %v329_v13 = vmul.f32 %v316_v50, %v282_v10  ;;  %v328_v15 = vmul.f32 %v316_v50, %v281_v14  ;;  %v1119_v50 = vld [vmem:[%s1290_s1] sm:$0xff]  ;;  %v1179_v10 = vld [vmem:[%s1290_s1 + $0x50] sm:$0xff] }
  0xf3   :  { %339 = vadd.xlane.f32.xlu0 %v324_v52  ;;  %337 = vadd.xlane.f32.xlu1 %v323_v53  ;;  %v330_v61 = vmul.f32 %v320_v56, %v283_v59  ;;  %v332_v1 = vmul.f32 %v320_v56, %v285_v63  ;;  %v333_v2 = vmul.f32 %v320_v56, %v286_v0  ;;  %v1129_v52 = vld [vmem:[%s1290_s1 + $0x10] sm:$0xff]  ;;  %v1134_v53 = vld [vmem:[%s1290_s1 + $0x18] sm:$0xff]  ;;  %v1148_v59 = vld [vmem:[%s1290_s1 + $0x28] sm:$0xff] }
  0xf4   :  { %v331_v6 = vmul.f32 %v320_v56, %v284_v3  ;;  %v335_v7 = vmul.f32 %v320_v56, %v288_v4  ;;  %v336_v9 = vmul.f32 %v320_v56, %v289_v5  ;;  %v334_v11 = vmul.f32 %v320_v56, %v287_v8  ;;  %v1160_v63 = vld [vmem:[%s1290_s1 + $0x38] sm:$0xff]  ;;  %v1167_v4 = vld [vmem:[%s1290_s1 + $0x40] sm:$0xff]  ;;  %v1172_v5 = vld [vmem:[%s1290_s1 + $0x48] sm:$0xff]  ;;  %1299 = vst [vmem:[#allocation3_spill] sm:$0xff] %v1179_v10 }
  0xf5   :  { %v350_v16 = vsel %vm349_vm1, %v329_v13, 0.0  ;;  %v669_v44 = vadd.f32 %v668_v42, %v667_v40  ;;  %v682_v45 = vadd.f32 %v681_v43, %v680_v41  ;;  %v637_v56 = vadd.f32 %v1129_v52, %v1119_v50  ;;  %v1189_v14 = vld [vmem:[%s1290_s1 + $0x60] sm:$0x1] }
  0xf6   :  { %v365_v12 = vsel %vm349_vm1, %v336_v9, 0.0  ;;  %v858_v8 = vmov 1983009808   ;;  %v642_v22 = vsel %vm349_vm1, %v1189_v14, 0.0 }
  0xf7   :  { %345 = vadd.xlane.f32.xlu0 %v327_v57  ;;  %341 = vadd.xlane.f32.xlu1 %v325_v58  ;;  %v670_v46 = vrot.slane %v669_v44, 4  ;;  %v683_v47 = vrot.slane %v682_v45, 4  ;;  %v650_v57 = vadd.f32 %v1134_v53, %v1124_v51  ;;  %v1143_v58 = vld [vmem:[%s1290_s1 + $0x20] sm:$0xff]  ;;  %v608_v9 = vunpack.c.l.s4 %v858_v8 }
  0xf8   :  { %v638_v60 = vadd.f32 %v637_v56, %v1143_v58 }
  0xf9   :  { %v671_v48 = vadd.f32 %v670_v46, %v669_v44  ;;  %v684_v49 = vadd.f32 %v683_v47, %v682_v45  ;;  %v609_v30 = vunpack.c.0.s8 %v608_v9 }
  0xfb   :  { %353 = vadd.xlane.f32.xlu0 %v330_v61  ;;  %343 = vadd.xlane.f32.xlu1 %v326_v62  ;;  %v672_v54 = vrot.slane %v671_v48, 2  ;;  %v685_v55 = vrot.slane %v684_v49, 2  ;;  %v651_v61 = vadd.f32 %v650_v57, %v1148_v59  ;;  %v1155_v62 = vld [vmem:[%s1290_s1 + $0x30] sm:$0xff]  ;;  %v1203_v44 = vsub.s32 %v609_v30, %v979_v31 }
  0xfd   :  { %v673_v0 = vadd.f32 %v672_v54, %v671_v48  ;;  %v652_v3 = vadd.f32 %v651_v61, %v1160_v63  ;;  %1302 = vst [vmem:[#allocation6_spill] sm:$0xff] %v1203_v44 }
  0xff   :  { %357 = vadd.xlane.f32.xlu0 %v332_v1  ;;  %359 = vadd.xlane.f32.xlu1 %v333_v2  ;;  %v686_v1 = vadd.f32 %v685_v55, %v684_v49  ;;  %v639_v2 = vadd.f32 %v638_v60, %v1155_v62 }
 0x101   :  { %v687_v13 = vrot.slane %v686_v1, 1 }
 0x103   :  { %355 = vadd.xlane.f32.xlu0 %v331_v6  ;;  %363 = vadd.xlane.f32.xlu1 %v335_v7  ;;  %v640_v6 = vadd.f32 %v639_v2, %v1167_v4  ;;  %v653_v7 = vadd.f32 %v652_v3, %v1172_v5  ;;  %v688_v35 = vadd.f32 %v687_v13, %v686_v1 }
 0x107   :  { %361 = vadd.xlane.f32.xlu0 %v334_v11  ;;  %366 = vadd.xlane.f32.xlu1 %v365_v12  ;;  %v1184_v11 = vld [vmem:[%s1290_s1 + $0x58] sm:$0xff]  ;;  %v674_v12 = vrot.slane %v673_v0, 1 }
 0x108   :  { %1300 = vst [vmem:[#allocation4_spill] sm:$0xff] %v1184_v11  ;;  %v654_v21 = vadd.f32 %v653_v7, %v1184_v11 }
 0x109   :  { %v675_v34 = vadd.f32 %v674_v12, %v673_v0 }
 0x10b   :  { %351 = vadd.xlane.f32.xlu0 %v350_v16  ;;  %347 = vadd.xlane.f32.xlu1 %v328_v15  ;;  %v1194_v15 = vld [vmem:[%s1290_s1 + $0x68] sm:$0x1]  ;;  %v641_v16 = vadd.f32 %v640_v6, %v1179_v10  ;;  %v701_v45 = vcombine.low %v675_v34, %v688_v35 }
 0x10c   :  { %1301 = vst [vmem:[#allocation5_spill] sm:$0xff] %v1194_v15  ;;  %v655_v25 = vsel %vm349_vm1, %v1194_v15, 0.0 }
 0x10d   :  { %v643_v26 = vadd.f32 %v642_v22, %v641_v16  ;;  %v656_v29 = vadd.f32 %v655_v25, %v654_v21  ;;  %v708_v56 = vrot.slane %v701_v45, %v1203_v44  ;;  %v369_v25 = vstv %s1292_s9 }
 0x10f   :  { %v644_v40 = vrot.slane %v643_v26, 4  ;;  %v657_v41 = vrot.slane %v656_v29, 4  ;;  %v711_v3 = vrot.slane %v708_v56, 7 }
 0x111   :  { %v645_v42 = vadd.f32 %v644_v40, %v643_v26  ;;  %v658_v43 = vadd.f32 %v657_v41, %v656_v29 }
 0x113   :  { %v646_v46 = vrot.slane %v645_v42, 2  ;;  %v659_v47 = vrot.slane %v658_v43, 2 }
 0x115   :  { %v647_v54 = vadd.f32 %v646_v46, %v645_v42  ;;  %v660_v55 = vadd.f32 %v659_v47, %v658_v43 }
 0x117   :  { %v648_v57 = vrot.slane %v647_v54, 1  ;;  %v661_v60 = vrot.slane %v660_v55, 1 }
 0x119   :  { %v649_v1 = vadd.f32 %v648_v57, %v647_v54  ;;  %v662_v2 = vadd.f32 %v661_v60, %v660_v55 }
 0x11b   :  { %v693_v6 = vcombine.low %v649_v1, %v662_v2 }
 0x11d   :  { %v700_v8 = vrot.slane %v693_v6, %v1203_v44 }
 0x11f   :  { %v712_v9 = vsel %vm627_vm2, %v711_v3, %v700_v8 }
 0x120   :  { %v713_v12 = vsel %vm629_vm3, %v711_v3, %v712_v9 }
 0x121   :  { %v714_v21 = vsel %vm631_vm4, %v711_v3, %v713_v12 }
 0x122   :  { %v715_v22 = vsel %vm633_vm5, %v711_v3, %v714_v21 }
 0x123   :  { %717 = vst [vmem:[%s1291_s11] sm:$0xf] %v715_v22 }
 0x17c   :  { %v340_v48 = vpop.xlane.xlu0 %339  ;;  %v338_v49 = vpop.xlane.xlu1 %337 }
 0x17d   :  { %v370_v42 = vadd.f32 %v369_v25, %v338_v49  ;;  %v371_v57 = vadd.f32 %v369_v25, %v340_v48 }
 0x180   :  { %v346_v61 = vpop.xlane.xlu0 %345  ;;  %v342_v0 = vpop.xlane.xlu1 %341 }
 0x181   :  { %v1217_v35 = vadd.f32 %v369_v25, %v342_v0  ;;  %v374_v0 = vadd.f32 %v369_v25, %v346_v61 }
 0x183   :  { %v384_v60 = vmax.f32 %v370_v42, %v1217_v35 }
 0x184   :  { %v354_v31 = vpop.xlane.xlu0 %353  ;;  %v344_v7 = vpop.xlane.xlu1 %343 }
 0x185   :  { %v377_v40 = vadd.f32 %v369_v25, %v354_v31  ;;  %v1219_v43 = vadd.f32 %v369_v25, %v344_v7 }
 0x187   :  { %v385_v6 = vmax.f32 %v371_v57, %v1219_v43 }
 0x188   :  { %v358_v13 = vpop.xlane.xlu0 %357  ;;  %v360_v16 = vpop.xlane.xlu1 %359 }
 0x189   :  { %v379_v30 = vadd.f32 %v369_v25, %v358_v13  ;;  %v380_v41 = vadd.f32 %v369_v25, %v360_v16  ;;  %v386_v13 = vmax.f32 %v384_v60, %v374_v0 }
 0x18b   :  { %v397_v47 = vmax.f32 %v377_v40, %v379_v30 }
 0x18c   :  { %v356_v26 = vpop.xlane.xlu0 %355  ;;  %v364_v29 = vpop.xlane.xlu1 %363 }
 0x18d   :  { %v378_v34 = vadd.f32 %v369_v25, %v356_v26  ;;  %v382_v1 = vadd.f32 %v369_v25, %v364_v29 }
 0x18f   :  { %v398_v54 = vmax.f32 %v378_v34, %v380_v41 }
 0x190   :  { %v362_v45 = vpop.xlane.xlu0 %361  ;;  %v367_v46 = vpop.xlane.xlu1 %366 }
 0x191   :  { %v381_v55 = vadd.f32 %v369_v25, %v362_v45  ;;  %v383_v56 = vadd.f32 %v369_v25, %v367_v46  ;;  %v400_v7 = vmax.f32 %v398_v54, %v382_v1 }
 0x193   :  { %v399_v2 = vmax.f32 %v397_v47, %v381_v55  ;;  %v401_v3 = vsel %vm349_vm1, %v383_v56, -inf }
 0x194   :  { %v352_v31 = vpop.xlane.xlu0 %351  ;;  %v348_v49 = vpop.xlane.xlu1 %347 }
 0x195   :  { %v402_v8 = vmax.f32 %v399_v2, %v401_v3  ;;  %v376_v9 = vadd.f32 %v369_v25, %v352_v31  ;;  %v375_v12 = vadd.f32 %v369_v25, %v348_v49 }
 0x197   :  { %v403_v16 = vmax.f32 %v402_v8, %v400_v7  ;;  %v388_v21 = vsel %vm349_vm1, %v376_v9, -inf  ;;  %v387_v48 = vmax.f32 %v385_v6, %v375_v12 }
 0x198   :  { %v389_v22 = vmax.f32 %v386_v13, %v388_v21 }
 0x199   :  { %v404_v26 = vrot.slane %v403_v16, 4 }
 0x19a   :  { %v390_v29 = vmax.f32 %v389_v22, %v387_v48 }
 0x19b   :  { %v405_v45 = vmax.f32 %v403_v16, %v404_v26 }
 0x19c   :  { %v391_v46 = vrot.slane %v390_v29, 4 }
 0x19d   :  { %v406_v47 = vrot.slane %v405_v45, 2 }
 0x19e   :  { %v392_v61 = vmax.f32 %v390_v29, %v391_v46 }
 0x19f   :  { %v407_v44 = vmax.f32 %v405_v45, %v406_v47 }
 0x1a0   :  { %v393_v11 = vrot.slane %v392_v61, 2 }
 0x1a1   :  { %v408_v15 = vrot.slane %v407_v44, 1 }
 0x1a2   :  { %v394_v10 = vmax.f32 %v392_v61, %v393_v11 }
 0x1a3   :  { %v409_v54 = vmax.f32 %v407_v44, %v408_v15 }
 0x1a4   :  { %v395_v2 = vrot.slane %v394_v10, 1 }
 0x1a5   :  { %v417_v3 = vsub.f32 %v377_v40, %v409_v54  ;;  %v418_v25 = vsub.f32 %v378_v34, %v409_v54  ;;  %v419_v60 = vsub.f32 %v379_v30, %v409_v54  ;;  %v420_v31 = vsub.f32 %v380_v41, %v409_v54 }
 0x1a6   :  { %v421_v49 = vsub.f32 %v381_v55, %v409_v54  ;;  %v396_v7 = vmax.f32 %v394_v10, %v395_v2  ;;  %v423_v6 = vsub.f32 %v383_v56, %v409_v54  ;;  %v422_v26 = vsub.f32 %v382_v1, %v409_v54 }
 0x1a7   :  { %v438_v8 = vmul.f32 1.442695, %v417_v3  ;;  %v440_v13 = vmul.f32 1.442695, %v418_v25  ;;  %v442_v21 = vmul.f32 1.442695, %v419_v60 }
 0x1a8   :  { %v410_v16 = vsub.f32 %v370_v42, %v396_v7  ;;  %v444_v48 = vmul.f32 1.442695, %v420_v31  ;;  %v411_v22 = vsub.f32 %v371_v57, %v396_v7  ;;  %v446_v29 = vmul.f32 1.442695, %v421_v49 }
 0x1a9   :  { %823 = vpow2.f32 %v438_v8  ;;  %v450_v11 = vmul.f32 1.442695, %v423_v6  ;;  %v412_v15 = vsub.f32 %v1217_v35, %v396_v7  ;;  %v413_v30 = vsub.f32 %v1219_v43, %v396_v7 }
 0x1aa   :  { %825 = vpow2.f32 %v440_v13  ;;  %v424_v44 = vmul.f32 1.442695, %v410_v16  ;;  %v426_v10 = vmul.f32 1.442695, %v411_v22  ;;  %v448_v34 = vmul.f32 1.442695, %v422_v26 }
 0x1ab   :  { %827 = vpow2.f32 %v442_v21  ;;  %v414_v40 = vsub.f32 %v374_v0, %v396_v7  ;;  %v428_v41 = vmul.f32 1.442695, %v412_v15  ;;  %v416_v42 = vsub.f32 %v376_v9, %v396_v7 }
 0x1ac   :  { %829 = vpow2.f32 %v444_v48  ;;  %v415_v55 = vsub.f32 %v375_v12, %v396_v7  ;;  %v430_v56 = vmul.f32 1.442695, %v413_v30 }
 0x1ad   :  { %831 = vpow2.f32 %v446_v29  ;;  %v432_v57 = vmul.f32 1.442695, %v414_v40  ;;  %v436_v35 = vmul.f32 1.442695, %v416_v42 }
 0x1ae   :  { %833 = vpow2.f32 %v450_v11  ;;  %v434_v1 = vmul.f32 1.442695, %v415_v55 }
 0x1af   :  { %835 = vpow2.f32 %v424_v44 }
 0x1b0   :  { %837 = vpow2.f32 %v426_v10 }
 0x1b1   :  { %839 = vpow2.f32 %v448_v34 }
 0x1b2   :  { %841 = vpow2.f32 %v428_v41 }
 0x1b3   :  { %843 = vpow2.f32 %v430_v56 }
 0x1b4   :  { %845 = vpow2.f32 %v432_v57 }
 0x1b5   :  { %847 = vpow2.f32 %v436_v35 }
 0x1b6   :  { %v824_v45 = vpop.eup %823  ;;  %849 = vpow2.f32 %v434_v1 }
 0x1b7   :  { %v826_v46 = vpop.eup %825 }
 0x1b8   :  { %v465_v43 = vadd.f32 %v826_v46, %v824_v45  ;;  %v828_v47 = vpop.eup %827 }
 0x1b9   :  { %v830_v0 = vpop.eup %829 }
 0x1ba   :  { %v466_v61 = vadd.f32 %v828_v47, %v465_v43  ;;  %v832_v9 = vpop.eup %831 }
 0x1bb   :  { %v834_v54 = vpop.eup %833 }
 0x1bc   :  { %v467_v12 = vadd.f32 %v830_v0, %v466_v61  ;;  %v836_v2 = vpop.eup %835  ;;  %v470_v6 = vsel %vm349_vm1, %v834_v54, 0.0 }
 0x1bd   :  { %v838_v3 = vpop.eup %837 }
 0x1be   :  { %v468_v25 = vadd.f32 %v832_v9, %v467_v12  ;;  %v840_v60 = vpop.eup %839  ;;  %v452_v31 = vadd.f32 %v838_v3, %v836_v2 }
 0x1bf   :  { %v842_v49 = vpop.eup %841 }
 0x1c0   :  { %v469_v7 = vadd.f32 %v840_v60, %v468_v25  ;;  %v453_v8 = vadd.f32 %v842_v49, %v452_v31  ;;  %v844_v13 = vpop.eup %843 }
 0x1c1   :  { %v1228_v48 = vpop.eup %845 }
 0x1c2   :  { %v471_v21 = vadd.f32 %v470_v6, %v469_v7  ;;  %v454_v16 = vadd.f32 %v844_v13, %v453_v8  ;;  %v1230_v26 = vpop.eup %847 }
 0x1c3   :  { %v1233_v11 = vpop.eup %849  ;;  %v457_v10 = vsel %vm349_vm1, %v1230_v26, 0.0 }
 0x1c4   :  { %v472_v22 = vrot.slane %v471_v21, 4  ;;  %v455_v29 = vadd.f32 %v1228_v48, %v454_v16 }
 0x1c6   :  { %v473_v15 = vadd.f32 %v472_v22, %v471_v21  ;;  %v456_v44 = vadd.f32 %v1233_v11, %v455_v29 }
 0x1c8   :  { %v474_v30 = vrot.slane %v473_v15, 2  ;;  %v458_v34 = vadd.f32 %v457_v10, %v456_v44 }
 0x1ca   :  { %v475_v40 = vadd.f32 %v474_v30, %v473_v15  ;;  %v459_v41 = vrot.slane %v458_v34, 4 }
 0x1cc   :  { %v476_v42 = vrot.slane %v475_v40, 1  ;;  %v460_v55 = vadd.f32 %v459_v41, %v458_v34 }
 0x1ce   :  { %v477_v56 = vadd.f32 %v476_v42, %v475_v40  ;;  %v461_v57 = vrot.slane %v460_v55, 2 }
 0x1d0   :  { %851 = vrcp.f32 %v477_v56  ;;  %v462_v35 = vadd.f32 %v461_v57, %v460_v55 }
 0x1d2   :  { %v463_v1 = vrot.slane %v462_v35, 1 }
 0x1d4   :  { %v464_v43 = vadd.f32 %v463_v1, %v462_v35 }
 0x1d6   :  { %853 = vrcp.f32 %v464_v43 }
 0x1dd   :  { %v852_v61 = vpop.eup %851 }
 0x1de   :  { %v487_v12 = vmul.f32 %v852_v61, %v824_v45  ;;  %v488_v25 = vmul.f32 %v852_v61, %v826_v46  ;;  %v489_v31 = vmul.f32 %v852_v61, %v828_v47  ;;  %v490_v7 = vmul.f32 %v852_v61, %v830_v0 }
 0x1df   :  { %v491_v22 = vmul.f32 %v852_v61, %v832_v9  ;;  %v492_v29 = vmul.f32 %v852_v61, %v840_v60  ;;  %v493_v15 = vmul.f32 %v852_v61, %v834_v54 }
 0x1e0   :  { %v536_v6 = vmul.f32 %v1033_v17, %v487_v12  ;;  %v537_v8 = vmul.f32 %v1038_v18, %v487_v12  ;;  %v538_v21 = vmul.f32 %v1043_v19, %v488_v25  ;;  %v539_v16 = vmul.f32 %v1048_v20, %v488_v25 }
 0x1e1   :  { %v540_v44 = vmul.f32 %v1057_v23, %v489_v31  ;;  %v541_v30 = vmul.f32 %v1062_v24, %v489_v31  ;;  %v542_v47 = vmul.f32 %v1069_v27, %v490_v7  ;;  %v543_v17 = vmul.f32 %v1074_v28, %v490_v7 }
 0x1e2   :  { %v576_v10 = vadd.f32 %v538_v21, %v536_v6  ;;  %v589_v45 = vadd.f32 %v539_v16, %v537_v8  ;;  %v544_v18 = vmul.f32 %v1081_v32, %v491_v22  ;;  %v545_v20 = vmul.f32 %v1086_v33, %v491_v22  ;;  %v1303_v21 = vld [vmem:[#allocation3_spill] sm:$0xff]  ;;  %v1304_v16 = vld [vmem:[#allocation5_spill] sm:$0xff] }
 0x1e3   :  { %v854_v46 = vpop.eup %853  ;;  %v546_v9 = vmul.f32 %v1093_v36, %v492_v29  ;;  %v548_v23 = vmul.f32 %v1103_v38, %v493_v15  ;;  %v549_v24 = vmul.f32 %v1108_v39, %v493_v15  ;;  %v547_v27 = vmul.f32 %v1098_v37, %v492_v29 }
 0x1e4   :  { %v577_v0 = vadd.f32 %v576_v10, %v540_v44  ;;  %v590_v19 = vadd.f32 %v589_v45, %v541_v30  ;;  %v480_v54 = vmul.f32 %v854_v46, %v836_v2  ;;  %v481_v60 = vmul.f32 %v854_v46, %v838_v3  ;;  %v1305_v44 = vld [vmem:[#allocation4_spill] sm:$0xff] }
 0x1e5   :  { %v482_v41 = vmul.f32 %v854_v46, %v842_v49  ;;  %v483_v2 = vmul.f32 %v854_v46, %v844_v13  ;;  %v581_v38 = vsel %vm349_vm1, %v548_v23, 0.0  ;;  %v594_v56 = vsel %vm349_vm1, %v549_v24, 0.0 }
 0x1e6   :  { %v578_v34 = vadd.f32 %v577_v0, %v542_v47  ;;  %v591_v40 = vadd.f32 %v590_v19, %v543_v17  ;;  %v522_v28 = vmul.f32 %v1119_v50, %v480_v54  ;;  %v524_v32 = vmul.f32 %v1129_v52, %v481_v60 }
 0x1e7   :  { %v523_v33 = vmul.f32 %v1124_v51, %v480_v54  ;;  %v525_v36 = vmul.f32 %v1134_v53, %v481_v60  ;;  %v484_v37 = vmul.f32 %v854_v46, %v1228_v48  ;;  %v486_v49 = vmul.f32 %v854_v46, %v1230_v26 }
 0x1e8   :  { %v579_v42 = vadd.f32 %v578_v34, %v544_v18  ;;  %v592_v55 = vadd.f32 %v591_v40, %v545_v20  ;;  %v526_v50 = vmul.f32 %v1143_v58, %v482_v41  ;;  %v550_v52 = vadd.f32 %v524_v32, %v522_v28  ;;  %v1306_v32 = vld [vmem:[#allocation6_spill] sm:$0xff] }
 0x1e9   :  { %v527_v51 = vmul.f32 %v1148_v59, %v482_v41  ;;  %v563_v1 = vadd.f32 %v525_v36, %v523_v33  ;;  %v485_v53 = vmul.f32 %v854_v46, %v1233_v11  ;;  %v528_v13 = vmul.f32 %v1155_v62, %v483_v2 }
 0x1ea   :  { %v580_v3 = vadd.f32 %v579_v42, %v546_v9  ;;  %v593_v39 = vadd.f32 %v592_v55, %v547_v27  ;;  %v551_v43 = vadd.f32 %v550_v52, %v526_v50  ;;  %v529_v25 = vmul.f32 %v1160_v63, %v483_v2 }
 0x1eb   :  { %v564_v48 = vadd.f32 %v563_v1, %v527_v51  ;;  %v530_v26 = vmul.f32 %v1167_v4, %v484_v37  ;;  %v531_v58 = vmul.f32 %v1172_v5, %v484_v37  ;;  %v534_v59 = vmul.f32 %v1189_v14, %v486_v49 }
 0x1ec   :  { %v582_v57 = vadd.f32 %v581_v38, %v580_v3  ;;  %v595_v35 = vadd.f32 %v594_v56, %v593_v39  ;;  %v552_v31 = vadd.f32 %v551_v43, %v528_v13  ;;  %v532_v11 = vmul.f32 %v1303_v21, %v485_v53 }
 0x1ed   :  { %v565_v8 = vadd.f32 %v564_v48, %v529_v25  ;;  %v535_v62 = vmul.f32 %v1304_v16, %v486_v49  ;;  %v533_v63 = vmul.f32 %v1305_v44, %v485_v53  ;;  %v555_v5 = vsel %vm349_vm1, %v534_v59, 0.0 }
 0x1ee   :  { %v583_v61 = vrot.slane %v582_v57, 4  ;;  %v596_v12 = vrot.slane %v595_v35, 4  ;;  %v553_v22 = vadd.f32 %v552_v31, %v530_v26 }
 0x1ef   :  { %v566_v30 = vadd.f32 %v565_v8, %v531_v58  ;;  %v568_v14 = vsel %vm349_vm1, %v535_v62, 0.0 }
 0x1f0   :  { %v584_v7 = vadd.f32 %v583_v61, %v582_v57  ;;  %v597_v6 = vadd.f32 %v596_v12, %v595_v35  ;;  %v554_v10 = vadd.f32 %v553_v22, %v532_v11 }
 0x1f1   :  { %v567_v46 = vadd.f32 %v566_v30, %v533_v63 }
 0x1f2   :  { %v585_v29 = vrot.slane %v584_v7, 2  ;;  %v598_v15 = vrot.slane %v597_v6, 2  ;;  %v556_v47 = vadd.f32 %v555_v5, %v554_v10 }
 0x1f3   :  { %v569_v0 = vadd.f32 %v568_v14, %v567_v46 }
 0x1f4   :  { %v586_v4 = vadd.f32 %v585_v29, %v584_v7  ;;  %v599_v45 = vadd.f32 %v598_v15, %v597_v6  ;;  %v557_v19 = vrot.slane %v556_v47, 4 }
 0x1f5   :  { %v570_v54 = vrot.slane %v569_v0, 4 }
 0x1f6   :  { %v587_v17 = vrot.slane %v586_v4, 1  ;;  %v600_v18 = vrot.slane %v599_v45, 1  ;;  %v558_v60 = vadd.f32 %v557_v19, %v556_v47 }
 0x1f7   :  { %v571_v23 = vadd.f32 %v570_v54, %v569_v0 }
 0x1f8   :  { %v588_v20 = vadd.f32 %v587_v17, %v586_v4  ;;  %v601_v9 = vadd.f32 %v600_v18, %v599_v45  ;;  %v559_v24 = vrot.slane %v558_v60, 2 }
 0x1f9   :  { %v572_v40 = vrot.slane %v571_v23, 2 }
 0x1fa   :  { %v614_v34 = vcombine.low %v588_v20, %v601_v9  ;;  %v560_v27 = vadd.f32 %v559_v24, %v558_v60 }
 0x1fb   :  { %v573_v41 = vadd.f32 %v572_v40, %v571_v23 }
 0x1fc   :  { %v561_v28 = vrot.slane %v560_v27, 1  ;;  %v621_v42 = vrot.slane %v614_v34, %v1306_v32 }
 0x1fd   :  { %v574_v55 = vrot.slane %v573_v41, 1 }
 0x1fe   :  { %v562_v33 = vadd.f32 %v561_v28, %v560_v27  ;;  %v626_v2 = vrot.slane %v621_v42, 7 }
 0x1ff   :  { %v575_v36 = vadd.f32 %v574_v55, %v573_v41 }
 0x201   :  { %v606_v3 = vcombine.low %v562_v33, %v575_v36 }
 0x203   :  { %v613_v38 = vrot.slane %v606_v3, %v1306_v32 }
 0x205   :  { %v628_v39 = vsel %vm627_vm2, %v626_v2, %v613_v38 }
 0x206   :  { %v630_v56 = vsel %vm629_vm3, %v626_v2, %v628_v39 }
 0x207   :  { %v632_v37 = vsel %vm631_vm4, %v626_v2, %v630_v56 }
 0x208   :  { %v634_v49 = vsel %vm633_vm5, %v626_v2, %v632_v37 }
 0x209   :  { %636 = vst [vmem:[%s1293_s10] sm:$0xf] %v634_v49 }

// kernel: base_model_forward.12
= control target key start
LH: loop header
LB: loop body
LE: loop exit
PB: predicated region body
PF: predicated region fallthrough
CT: control target
= control target key end

     0   :  { %v1076_v35 = vmov 0.0   ;;  %vm1077_vm0 = vmmov 0   ;;  %s1376_s4 = inlined_call_operand.vmem [shape: bf16[256,128], index: 4, kind: input, shape index: {}]   ;;  %s1377_s6 = inlined_call_operand.vmem [shape: bf16[256,128], index: 6, kind: input, shape index: {}]   ;;  %s1378_s0 = inlined_call_operand.vmem [shape: f32[2,256], index: 0, kind: input, shape index: {}]   ;;  %s1379_s1 = inlined_call_operand.vmem [shape: f32[2,256], index: 1, kind: input, shape index: {}]   ;;  %s1380_s8 = inlined_call_operand.vmem [shape: bf16[128,128], index: 8, kind: input, shape index: {}]   ;;  %s1381_s10 = inlined_call_operand.vmem [shape: bf16[128,128], index: 10, kind: input, shape index: {}]   ;;  %s1382_s2 = inlined_call_operand.vmem [shape: f32[2,128], index: 2, kind: input, shape index: {}]   ;;  %s1383_s3 = inlined_call_operand.vmem [shape: f32[2,128], index: 3, kind: input, shape index: {}]   ;;  %s1384_s12 = inlined_call_operand.vmem [shape: bf16[128,256], index: 12, kind: input, shape index: {}]   ;;  %s1385_s5 = inlined_call_operand.vmem [shape: f32[1,128], index: 5, kind: input, shape index: {}]   ;;  %s1386_s7 = inlined_call_operand.vmem [shape: f32[1,128], index: 7, kind: input, shape index: {}]   ;;  %s1387_s9 = inlined_call_operand.vmem [shape: f32[1,128], index: 9, kind: input, shape index: {}]   ;;  %s1388_s11 = inlined_call_operand.vmem [shape: f32[1,128], index: 11, kind: input, shape index: {}]   ;;  %s1389_s13 = inlined_call_operand.vmem [shape: f32[1,256], index: 13, kind: input, shape index: {}]   ;;  %s1390_s14 = inlined_call_operand.vmem [shape: f32[2,256], index: 14, kind: output, shape index: {}]  }
   0x1   :  { %v1004_v0 = vld [vmem:[%s1376_s4 + $0x78] sm:$0xff]   ;;  %v1008_v4 = vld [vmem:[%s1376_s4 + $0x70] sm:$0xff]   ;;  %v1012_v8 = vld [vmem:[%s1376_s4 + $0x68] sm:$0xff]  }
   0x2   :  { %v1005_v1 = vld [vmem:[%s1377_s6 + $0x78] sm:$0xff]   ;;  %899 = vmatprep.subr.bf16.mxu0 %v1004_v0  ;;  %v1009_v5 = vld [vmem:[%s1377_s6 + $0x70] sm:$0xff]   ;;  %v1013_v9 = vld [vmem:[%s1377_s6 + $0x68] sm:$0xff]  }
   0x3   :  { %v1006_v2 = vld [vmem:[%s1376_s4 + $0x38] sm:$0xff]   ;;  %921 = vmatprep.subr.bf16.mxu1 %v1005_v1  ;;  %v1010_v6 = vld [vmem:[%s1376_s4 + $0x30] sm:$0xff]   ;;  %v1014_v10 = vld [vmem:[%s1376_s4 + $0x28] sm:$0xff]  }
   0x4   :  { %v1007_v3 = vld [vmem:[%s1377_s6 + $0x38] sm:$0xff]   ;;  %900 = vmatpush3.bf16.msra.mxu0 %v1006_v2  ;;  %v1011_v7 = vld [vmem:[%s1377_s6 + $0x30] sm:$0xff]   ;;  %v1015_v11 = vld [vmem:[%s1377_s6 + $0x28] sm:$0xff]  }
   0x5   :  { %922 = vmatpush3.bf16.msra.mxu1 %v1007_v3  ;;  %901 = vmatprep.subr.bf16.mxu0 %v1008_v4  ;;  %v1016_v12 = vld [vmem:[%s1376_s4 + $0x60] sm:$0xff]   ;;  %v1020_v16 = vld [vmem:[%s1376_s4 + $0x58] sm:$0xff]   ;;  %v1024_v20 = vld [vmem:[%s1376_s4 + $0x50] sm:$0xff]  }
   0x6   :  { %923 = vmatprep.subr.bf16.mxu1 %v1009_v5  ;;  %v1017_v13 = vld [vmem:[%s1377_s6 + $0x60] sm:$0xff]   ;;  %v1021_v17 = vld [vmem:[%s1377_s6 + $0x58] sm:$0xff]   ;;  %v1025_v21 = vld [vmem:[%s1377_s6 + $0x50] sm:$0xff]  }
   0x7   :  { %v1018_v14 = vld [vmem:[%s1376_s4 + $0x20] sm:$0xff]   ;;  %v1022_v18 = vld [vmem:[%s1376_s4 + $0x18] sm:$0xff]   ;;  %v1026_v22 = vld [vmem:[%s1376_s4 + $0x10] sm:$0xff]  }
   0x8   :  { %902 = vmatpush3.bf16.msra.mxu0 %v1010_v6  ;;  %v1019_v15 = vld [vmem:[%s1377_s6 + $0x20] sm:$0xff]   ;;  %v1023_v19 = vld [vmem:[%s1377_s6 + $0x18] sm:$0xff]   ;;  %v1027_v23 = vld [vmem:[%s1377_s6 + $0x10] sm:$0xff]  }
   0x9   :  { %924 = vmatpush3.bf16.msra.mxu1 %v1011_v7  ;;  %903 = vmatprep.subr.bf16.mxu0 %v1012_v8  ;;  %v1028_v24 = vld [vmem:[%s1376_s4 + $0x48] sm:$0xff]   ;;  %v1032_v28 = vld [vmem:[%s1376_s4 + $0x40] sm:$0xff]   ;;  %v1036_v40 = vld [vmem:[%s1380_s8 + $0x38] sm:$0xff]  }
   0xa   :  { %925 = vmatprep.subr.bf16.mxu1 %v1013_v9  ;;  %v1029_v25 = vld [vmem:[%s1377_s6 + $0x48] sm:$0xff]   ;;  %v1033_v29 = vld [vmem:[%s1377_s6 + $0x40] sm:$0xff]   ;;  %v1037_v42 = vld [vmem:[%s1381_s10 + $0x38] sm:$0xff]  }
   0xb   :  { %v1030_v26 = vld [vmem:[%s1376_s4 + $0x8] sm:$0xff]   ;;  %v1034_v30 = vld [vmem:[%s1376_s4] sm:$0xff]   ;;  %v1038_v43 = vld [vmem:[%s1380_s8 + $0x30] sm:$0xff]  }
   0xc   :  { %904 = vmatpush3.bf16.msra.mxu0 %v1014_v10  ;;  %v1031_v27 = vld [vmem:[%s1377_s6 + $0x8] sm:$0xff]   ;;  %v1035_v31 = vld [vmem:[%s1377_s6] sm:$0xff]   ;;  %v1039_v44 = vld [vmem:[%s1381_s10 + $0x30] sm:$0xff]  }
   0xd   :  { %926 = vmatpush3.bf16.msra.mxu1 %v1015_v11  ;;  %905 = vmatprep.subr.bf16.mxu0 %v1016_v12  ;;  %v828_v32 = vld.sshfl [vmem:[%s1378_s0] sm:$0x33 pattern:$0x76325410]  ;;  %v1040_v45 = vld [vmem:[%s1380_s8 + $0x28] sm:$0xff]   ;;  %v1044_v49 = vld [vmem:[%s1380_s8 + $0x18] sm:$0xff]  }
   0xe   :  { %927 = vmatprep.subr.bf16.mxu1 %v1017_v13  ;;  %v57_v33 = vcombine.high %v828_v32, %v828_v32  ;;  %v846_v34 = vld.sshfl [vmem:[%s1379_s1] sm:$0x33 pattern:$0x76325410]  ;;  %v60_v36 = vpack.c.bf16 %v828_v32, %v828_v32  ;;  %v1041_v46 = vld [vmem:[%s1381_s10 + $0x28] sm:$0xff]   ;;  %v1045_v50 = vld [vmem:[%s1381_s10 + $0x18] sm:$0xff]  }
   0xf   :  { %v247_v37 = vcombine.high %v846_v34, %v846_v34  ;;  %v250_v39 = vpack.c.bf16 %v846_v34, %v846_v34  ;;  %v1042_v47 = vld [vmem:[%s1380_s8 + $0x20] sm:$0xff]   ;;  %v1046_v51 = vld [vmem:[%s1380_s8 + $0x10] sm:$0xff]   ;;  %v1048_v53 = vld [vmem:[%s1380_s8 + $0x8] sm:$0xff]   ;;  %v1078_v13 = vmov 0  }
  0x10   :  { %906 = vmatpush3.bf16.msra.mxu0 %v1018_v14  ;;  %v61_v38 = vpack.c.bf16 %v57_v33, %v57_v33  ;;  %v1043_v48 = vld [vmem:[%s1381_s10 + $0x20] sm:$0xff]   ;;  %v1047_v52 = vld [vmem:[%s1381_s10 + $0x10] sm:$0xff]   ;;  %v1049_v54 = vld [vmem:[%s1381_s10 + $0x8] sm:$0xff]  }
  0x11   :  { %928 = vmatpush3.bf16.msra.mxu1 %v1019_v15  ;;  %907 = vmatprep.subr.bf16.mxu0 %v1020_v16  ;;  %v251_v41 = vpack.c.bf16 %v247_v37, %v247_v37  ;;  %v1050_v55 = vld [vmem:[%s1380_s8] sm:$0xff]   ;;  %v1052_v61 = vld [vmem:[%s1384_s12 + $0x70] ss:$8 sps:$4 sm:$0xff]   ;;  %v1054_v62 = vld [vmem:[%s1384_s12 + $0x74] ss:$8 sps:$4 sm:$0xff]  }
  0x12   :  { %929 = vmatprep.subr.bf16.mxu1 %v1021_v17  ;;  %229 = vmatprep.mubr.bf16.mxu0 %v61_v38  ;;  %v429_v56 = vld [vmem:[%s1382_s2] sm:$0x3]  ;;  %v1057_v63 = vld [vmem:[%s1384_s12 + $0x64] ss:$8 sps:$4 sm:$0xff]   ;;  %v1060_v1 = vld [vmem:[%s1384_s12 + $0x54] ss:$8 sps:$4 sm:$0xff]  }
  0x13   :  { %419 = vmatprep.mubr.bf16.mxu1 %v251_v41  ;;  %v1051_v57 = vld [vmem:[%s1381_s10] sm:$0xff]   ;;  %v430_v59 = vpack.c.bf16 %v429_v56, %v429_v56  ;;  %v1058_v2 = vld [vmem:[%s1384_s12 + $0x50] ss:$8 sps:$4 sm:$0xff]   ;;  %v1066_v5 = vld [vmem:[%s1384_s12 + $0x34] ss:$8 sps:$4 sm:$0xff]  }
  0x14   :  { %908 = vmatpush3.bf16.msra.mxu0 %v1022_v18  ;;  %v544_v58 = vld [vmem:[%s1383_s3] sm:$0x3]  ;;  %v1063_v3 = vld [vmem:[%s1384_s12 + $0x44] ss:$8 sps:$4 sm:$0xff]   ;;  %v1064_v6 = vld [vmem:[%s1384_s12 + $0x30] ss:$8 sps:$4 sm:$0xff]  }
  0x15   :  { %930 = vmatpush3.bf16.msra.mxu1 %v1023_v19  ;;  %909 = vmatprep.subr.bf16.mxu0 %v1024_v20  ;;  %v545_v60 = vpack.c.bf16 %v544_v58, %v544_v58  ;;  %v1055_v0 = vld [vmem:[%s1384_s12 + $0x60] ss:$8 sps:$4 sm:$0xff]   ;;  %v1069_v7 = vld [vmem:[%s1384_s12 + $0x24] ss:$8 sps:$4 sm:$0xff]   ;;  %v1072_v9 = vld [vmem:[%s1384_s12 + $0x14] ss:$8 sps:$4 sm:$0xff]  }
  0x16   :  { %931 = vmatprep.subr.bf16.mxu1 %v1025_v21  ;;  %v1061_v4 = vld [vmem:[%s1384_s12 + $0x40] ss:$8 sps:$4 sm:$0xff]   ;;  %v1070_v10 = vld [vmem:[%s1384_s12 + $0x10] ss:$8 sps:$4 sm:$0xff]   ;;  %v1075_v11 = vld [vmem:[%s1384_s12 + $0x4] ss:$8 sps:$4 sm:$0xff]  }
  0x17   :  { %v1067_v8 = vld [vmem:[%s1384_s12 + $0x20] ss:$8 sps:$4 sm:$0xff]  }
  0x18   :  { %910 = vmatpush3.bf16.msra.mxu0 %v1026_v22  ;;  %v1073_v12 = vld [vmem:[%s1384_s12] ss:$8 sps:$4 sm:$0xff]  }
  0x19   :  { %932 = vmatpush3.bf16.msra.mxu1 %v1027_v23  ;;  %911 = vmatprep.subr.bf16.mxu0 %v1028_v24  ;;  %v829_v24 = vld [vmem:[%s1385_s5] ss:$0 sm:$0xff] }
  0x1a   :  { %933 = vmatprep.subr.bf16.mxu1 %v1029_v25  ;;  %v847_v25 = vld [vmem:[%s1386_s7] ss:$0 sm:$0xff] }
  0x1c   :  { %912 = vmatpush3.bf16.msra.mxu0 %v1030_v26 }
  0x1d   :  { %934 = vmatpush3.bf16.msra.mxu1 %v1031_v27  ;;  %913 = vmatprep.subr.bf16.mxu0 %v1032_v28  ;;  %v864_v28 = vld [vmem:[%s1387_s9] ss:$0 sm:$0xff] }
  0x1e   :  { %935 = vmatprep.subr.bf16.mxu1 %v1033_v29 }
  0x20   :  { %914 = vmatpush3.bf16.msra.mxu0 %v1034_v30 }
  0x21   :  { %936 = vmatpush3.bf16.msra.mxu1 %v1035_v31  ;;  %961 = vmatprep.subr.bf16.mxu0 %v1076_v35  ;;  %v873_v31 = vld [vmem:[%s1388_s11] ss:$0 sm:$0xff] }
  0x22   :  { %981 = vmatprep.subr.bf16.mxu1 %v1076_v35 }
  0x23   :  { %230 = vmatmul.mubr.bf16.vlgmr.msra.gmra.mxu0 %v60_v36 }
  0x24   :  { %420 = vmatmul.mubr.bf16.vlgmr.msra.gmra.mxu1 %v250_v39  ;;  %962 = vmatpush3.bf16.msra.mxu0 %v1036_v40 }
  0x25   :  { %982 = vmatpush3.bf16.msra.mxu1 %v1037_v42  ;;  %963 = vmatprep.subr.bf16.mxu0 %v1076_v35 }
  0x26   :  { %983 = vmatprep.subr.bf16.mxu1 %v1076_v35  ;;  %977 = vmatprep.mubr.msk.bf16.mxu0 %vm1077_vm0, %v1076_v35 }
  0x27   :  { %997 = vmatprep.mubr.msk.bf16.mxu1 %vm1077_vm0, %v1076_v35 }
  0x28   :  { %964 = vmatpush3.bf16.msra.mxu0 %v1038_v43 }
  0x29   :  { %984 = vmatpush3.bf16.msra.mxu1 %v1039_v44  ;;  %965 = vmatprep.subr.bf16.mxu0 %v1076_v35 }
  0x2a   :  { %985 = vmatprep.subr.bf16.mxu1 %v1076_v35 }
  0x2c   :  { %966 = vmatpush3.bf16.msra.mxu0 %v1040_v45 }
  0x2d   :  { %986 = vmatpush3.bf16.msra.mxu1 %v1041_v46  ;;  %967 = vmatprep.subr.bf16.mxu0 %v1076_v35 }
  0x2e   :  { %987 = vmatprep.subr.bf16.mxu1 %v1076_v35 }
  0x30   :  { %968 = vmatpush3.bf16.msra.mxu0 %v1042_v47 }
  0x31   :  { %988 = vmatpush3.bf16.msra.mxu1 %v1043_v48  ;;  %969 = vmatprep.subr.bf16.mxu0 %v1076_v35 }
  0x32   :  { %989 = vmatprep.subr.bf16.mxu1 %v1076_v35 }
  0x34   :  { %970 = vmatpush3.bf16.msra.mxu0 %v1044_v49  ;;  %v679_v49 = vlaneseq }
  0x35   :  { %990 = vmatpush3.bf16.msra.mxu1 %v1045_v50  ;;  %971 = vmatprep.subr.bf16.mxu0 %v1076_v35 }
  0x36   :  { %991 = vmatprep.subr.bf16.mxu1 %v1076_v35  ;;  %v680_v50 = vshrl.u32 %v679_v49, 7 }
  0x38   :  { %972 = vmatpush3.bf16.msra.mxu0 %v1046_v51  ;;  %v681_v51 = vsub.s32 0, %v680_v50 }
  0x39   :  { %992 = vmatpush3.bf16.msra.mxu1 %v1047_v52  ;;  %973 = vmatprep.subr.bf16.mxu0 %v1076_v35  ;;  %v677_v52 = vld [vmem:[%s1389_s13] sm:$0x3] }
  0x3a   :  { %993 = vmatprep.subr.bf16.mxu1 %v1076_v35 }
  0x3c   :  { %974 = vmatpush3.bf16.msra.mxu0 %v1048_v53  ;;  %v685_v53 = vsub.s32 1, %v680_v50 }
  0x3d   :  { %994 = vmatpush3.bf16.msra.mxu1 %v1049_v54  ;;  %975 = vmatprep.subr.bf16.mxu0 %v1076_v35  ;;  %v682_v54 = vrot.slane %v677_v52, %v681_v51 }
  0x3e   :  { %995 = vmatprep.subr.bf16.mxu1 %v1076_v35 }
  0x40   :  { %976 = vmatpush3.bf16.msra.mxu0 %v1050_v55  ;;  %v686_v55 = vrot.slane %v677_v52, %v685_v53 }
  0x41   :  { %996 = vmatpush3.bf16.msra.mxu1 %v1051_v57  ;;  %769 = vmatprep.subr.bf16.mxu0 %v1054_v62 }
  0x43   :  { %978 = vmatmul.mubr.bf16.vlgmr.msra.gmra.mxu0 %v430_v59 }
  0x44   :  { %998 = vmatmul.mubr.bf16.vlgmr.msra.gmra.mxu1 %v545_v60  ;;  %770 = vmatpush1.bf16.msra.mxu0 %v1052_v61 }
  0x45   :  { %771 = vmatprep.subr.bf16.mxu0 %v1057_v63  ;;  %801 = vmatprep.mubr.bf16.mxu0 %v1078_v13 }
  0x48   :  { %772 = vmatpush1.bf16.msra.mxu0 %v1055_v0 }
  0x49   :  { %773 = vmatprep.subr.bf16.mxu0 %v1060_v1 }
  0x4c   :  { %774 = vmatpush1.bf16.msra.mxu0 %v1058_v2 }
  0x4d   :  { %775 = vmatprep.subr.bf16.mxu0 %v1063_v3 }
  0x50   :  { %776 = vmatpush1.bf16.msra.mxu0 %v1061_v4 }
  0x51   :  { %777 = vmatprep.subr.bf16.mxu0 %v1066_v5 }
  0x54   :  { %778 = vmatpush1.bf16.msra.mxu0 %v1064_v6 }
  0x55   :  { %779 = vmatprep.subr.bf16.mxu0 %v1069_v7 }
  0x58   :  { %780 = vmatpush1.bf16.msra.mxu0 %v1067_v8 }
  0x59   :  { %781 = vmatprep.subr.bf16.mxu0 %v1072_v9 }
  0x5c   :  { %782 = vmatpush1.bf16.msra.mxu0 %v1070_v10 }
  0x5d   :  { %783 = vmatprep.subr.bf16.mxu0 %v1075_v11 }
  0x60   :  { %784 = vmatpush1.bf16.msra.mxu0 %v1073_v12 }
  0xe3   :  { %v915_v14 = vpop.f32.mrf.mxu0 }
  0xe4   :  { %v937_v15 = vpop.f32.mrf.mxu1 }
  0xe5   :  { %v916_v16 = vpop.f32.mrf.mxu0 }
  0xe6   :  { %v938_v17 = vpop.f32.mrf.mxu1  ;;  %v917_v22 = vadd.f32 %v916_v16, %v915_v14 }
  0xe7   :  { %v918_v18 = vpop.f32.mrf.mxu0  ;;  %v939_v23 = vadd.f32 %v938_v17, %v937_v15 }
  0xe8   :  { %v940_v19 = vpop.f32.mrf.mxu1  ;;  %v232_v26 = vadd.f32 %v917_v22, %v829_v24 }
  0xe9   :  { %v919_v20 = vpop.f32.mrf.mxu0  ;;  %v422_v27 = vadd.f32 %v939_v23, %v847_v25 }
  0xea   :  { %v941_v21 = vpop.f32.mrf.mxu1  ;;  %v237_v29 = vmax.f32 %v232_v26, 0.0 }
  0xeb   :  { %v427_v30 = vmax.f32 %v422_v27, 0.0 }
  0xed   :  { %v428_v37 = vadd.f32 %v427_v30, %v237_v29 }
 0x103   :  { %v536_v32 = vpop.f32.mrf.mxu0 }
 0x104   :  { %v537_v33 = vadd.f32 %v864_v28, %v536_v32  ;;  %v651_v34 = vpop.f32.mrf.mxu1 }
 0x105   :  { %v652_v35 = vadd.f32 %v873_v31, %v651_v34  ;;  %v979_v36 = vpop.f32.mrf.mxu0 }
 0x106   :  { %v542_v38 = vmax.f32 %v537_v33, 0.0  ;;  %v999_v39 = vpop.f32.mrf.mxu1 }
 0x107   :  { %v657_v40 = vmax.f32 %v652_v35, 0.0  ;;  %v539_v41 = vpop.f32.mrf.mxu0 }
 0x108   :  { %v543_v42 = vadd.f32 %v542_v38, %v428_v37  ;;  %v654_v43 = vpop.f32.mrf.mxu1 }
 0x109   :  { %v980_v44 = vpop.f32.mrf.mxu0 }
 0x10a   :  { %v658_v45 = vadd.f32 %v657_v40, %v543_v42  ;;  %v1000_v46 = vpop.f32.mrf.mxu1 }
 0x10c   :  { %v659_v47 = vmul.f32 0.25, %v658_v45 }
 0x10e   :  { %v660_v48 = vpack.c.bf16 %v659_v47, %v659_v47 }
 0x110   :  { %802 = vmatmul.mubr.bf16.vlgmr.msra.gmra.mxu0 %v660_v48 }
 0x1d0   :  { %v803_v56 = vpop.f32.mrf.mxu0 }
 0x1d1   :  { %v804_v57 = vadd.f32 %v803_v56, %v682_v54 }
 0x1d2   :  { %v805_v58 = vpop.f32.mrf.mxu0 }
 0x1d3   :  { %v806_v59 = vadd.f32 %v805_v58, %v686_v55  ;;  %v810_v61 = vmax.f32 %v804_v57, 0.0 }
 0x1d4   :  { %v807_v60 = vpop.f32.mrf.mxu0 }
 0x1d5   :  { %v811_v62 = vmax.f32 %v806_v59, 0.0 }
 0x1d6   :  { %v808_v63 = vpop.f32.mrf.mxu0 }
 0x1d7   :  { %v814_v0 = vcombine.low %v810_v61, %v811_v62 }
 0x1d9   :  { %898 = vst.sshfl [vmem:[%s1390_s14] sm:$0x33 pattern:$0x76325410] %v814_v0 }

</bundles_post_ra>
